<compile_context>
chip_gen: v7x
topology: tpu7x:2x2x1
jax: 0.10.0
libtpu: 0.0.40
codegen_flags: <defaults>
</compile_context>

<pallas_src>
import functools

import jax
import jax.numpy as jnp
from jax import lax
from jax.experimental import pallas as pl
from jax.experimental.pallas import tpu as pltpu

EPS = 1e-5
_VMEM_LIMIT = 32 * 1024 * 1024  # modest explicit limit; safe on v5e/v6e/v7x


def _conv_stats_kernel(xp_ref, w_ref, mask_ref, y_ref, stats_ref, taps_ref,
                       *, H, W, Cin):
    """One image: 3x3 conv as a single K=9*Cin matmul + BN partial stats.

    xp_ref    : (1, Cin, Lp) bf16  zero-padded input, spatially flattened
                                   (pads: 1 top / 2 bottom / 1 left / 1 right),
                                   Lp = (H+3)*(W+2)
    w_ref     : (Cout, 9*Cin) bf16 conv weights, K order = (dh, dw, cin)
    mask_ref  : (1, Lw)       f32  1.0 on valid lanes, 0.0 on junk columns
    y_ref     : (1, Cout, Lw) f32  raw conv output, "wide" layout
                                   (lane p = i*(W+2)+j; columns j>=W are junk)
    stats_ref : (1, Cout, 2)  f32  per-image [sum, sum-of-squares] (valid only)
    taps_ref  : (9*Cin, Lw)  bf16 VMEM scratch (im2col built in VMEM)
    """
    Wp = W + 2
    Lw = H * Wp

    # im2col in VMEM: every 3x3 tap is a *contiguous* length-Lw window of the
    # flattened padded image, and the in-window position i*(W+2)+j is the same
    # for every tap (no reshapes / gathers needed).
    for t in range(9):
        dh, dw = t // 3, t % 3
        off = dh * Wp + dw
        taps_ref[t * Cin:(t + 1) * Cin, :] = xp_ref[0, :, off:off + Lw]

    # Single MXU matmul (collapses the 9 per-tap matmuls), f32 accumulation.
    y = jnp.dot(w_ref[...], taps_ref[...], preferred_element_type=jnp.float32)
    y_ref[0] = y  # (Cout, Lw): lane-dense store

    # BatchNorm partial statistics over this image's valid pixels only.
    ym = y * mask_ref[...]
    stats_ref[0, :, 0:1] = jnp.sum(ym, axis=-1, keepdims=True)
    stats_ref[0, :, 1:2] = jnp.sum(ym * ym, axis=-1, keepdims=True)


def _affine_relu_kernel(y_ref, s_ref, b_ref, o_ref):
    """Per-channel affine (folded BatchNorm) + ReLU, lane-dense."""
    y = y_ref[0]                                    # (Cout, Lw) f32
    o_ref[0] = jnp.maximum(y * s_ref[...] + b_ref[...], 0.0).astype(o_ref.dtype)


def _conv_stats(xp_flat, w2d_bf16, mask, H, W):
    N, Cin, Lp = xp_flat.shape
    Cout = w2d_bf16.shape[0]
    Lw = H * (W + 2)
    kernel = functools.partial(_conv_stats_kernel, H=H, W=W, Cin=Cin)
    return pl.pallas_call(
        kernel,
        grid=(N,),
        in_specs=[
            pl.BlockSpec((1, Cin, Lp), lambda n: (n, 0, 0)),
            pl.BlockSpec((Cout, 9 * Cin), lambda n: (0, 0)),  # resident weights
            pl.BlockSpec((1, Lw), lambda n: (0, 0)),           # resident mask
        ],
        out_specs=(
            pl.BlockSpec((1, Cout, Lw), lambda n: (n, 0, 0)),
            pl.BlockSpec((1, Cout, 2), lambda n: (n, 0, 0)),
        ),
        out_shape=(
            jax.ShapeDtypeStruct((N, Cout, Lw), jnp.float32),
            jax.ShapeDtypeStruct((N, Cout, 2), jnp.float32),
        ),
        scratch_shapes=[pltpu.VMEM((9 * Cin, Lw), jnp.bfloat16)],
        compiler_params=pltpu.CompilerParams(
            dimension_semantics=("parallel",),
            vmem_limit_bytes=_VMEM_LIMIT),
    )(xp_flat, w2d_bf16, mask)


def _affine_relu(y, scale, bias, out_dtype):
    N, Cout, Lw = y.shape
    return pl.pallas_call(
        _affine_relu_kernel,
        grid=(N,),
        in_specs=[
            pl.BlockSpec((1, Cout, Lw), lambda n: (n, 0, 0)),
            pl.BlockSpec((Cout, 1), lambda n: (0, 0)),
            pl.BlockSpec((Cout, 1), lambda n: (0, 0)),
        ],
        out_specs=pl.BlockSpec((1, Cout, Lw), lambda n: (n, 0, 0)),
        out_shape=jax.ShapeDtypeStruct((N, Cout, Lw), out_dtype),
        compiler_params=pltpu.CompilerParams(
            dimension_semantics=("parallel",),
            vmem_limit_bytes=_VMEM_LIMIT),
    )(y, scale, bias)


@jax.jit
def triple_conv_up(x_nchw, params):
    """Forward pass of TripleConvUp. x_nchw: (N, Cin, H, W) f32 -> (N, Cout, H, W)."""
    n, _, h, w = x_nchw.shape
    wp = w + 2
    lw = h * wp
    cnt = n * h * w
    # Valid-lane mask for the wide conv-output layout (lane p = i*(W+2)+j).
    mask = (jnp.arange(lw, dtype=jnp.int32) % wp < w).astype(jnp.float32)[None, :]

    x = x_nchw
    num_layers = len(params)
    for li, (w2d, gamma, beta) in enumerate(params):
        cout = w2d.shape[0]
        # Zero-pad (1 top / 2 bottom / 1 left / 1 right) and flatten spatial.
        xp = jnp.pad(x.astype(jnp.bfloat16), ((0, 0), (0, 0), (1, 2), (1, 1)))
        xp_flat = xp.reshape(n, xp.shape[1], (h + 3) * wp)

        y, stats = _conv_stats(xp_flat, w2d.astype(jnp.bfloat16), mask, h, w)

        # True batch statistics (training-mode BN), folded into scale/bias.
        tot = jnp.sum(stats, axis=0)                 # (Cout, 2)
        mean = tot[:, 0] / cnt
        var = tot[:, 1] / cnt - mean * mean          # E[x^2] - E[x]^2
        scale = gamma * lax.rsqrt(var + EPS)
        bias = beta - mean * scale

        out_dtype = jnp.float32 if li == num_layers - 1 else jnp.bfloat16
        o = _affine_relu(y, scale[:, None], bias[:, None], out_dtype)

        # Drop the 2 junk columns per row -> back to NCHW (N, Cout, H, W).
        x = o.reshape(n, cout, h, wp)[:, :, :, :w]
        # TODO(synk): the re-pad for the next layer still round-trips HBM in XLA
        # glue; it could be fused into the affine kernel's store path.
    return x


def _init_params(key, in_channels, out_channels):
    """Deterministic params. Conv weights are stored as (Cout, 9*Cin) f32 with
    K order (dh, dw, cin); the wrapper casts them to bf16 for the MXU."""
    layer_io = [(in_channels, in_channels),
                (in_channels, in_channels),
                (in_channels, out_channels)]
    params = []
    for li, (cin, cout) in enumerate(layer_io):
        kw, kg, kb = jax.random.split(jax.random.fold_in(key, li), 3)
        w_torch = 0.1 * jax.random.normal(kw, (cout, cin, 3, 3), jnp.float32)
        w2d = jnp.transpose(w_torch, (0, 2, 3, 1)).reshape(cout, 9 * cin)
        gamma = 1.0 + 0.1 * jax.random.normal(kg, (cout,), jnp.float32)
        beta = 0.1 * jax.random.normal(kb, (cout,), jnp.float32)
        params.append((w2d, gamma, beta))
    return params


def _reference(x_nchw, params, emulate_bf16):
    """Pure-JAX reference (lax.conv). If emulate_bf16, round the conv operands
    to bf16 (f32 accumulation), matching the kernel's dtype policy exactly."""
    def rnd(v):
        return v.astype(jnp.bfloat16).astype(jnp.float32) if emulate_bf16 else v

    x = x_nchw.astype(jnp.float32)
    for (w2d, gamma, beta) in params:
        cout = w2d.shape[0]
        cin = w2d.shape[1] // 9
        w_oihw = jnp.transpose(w2d.reshape(cout, 3, 3, cin), (0, 3, 1, 2))
        y = lax.conv_general_dilated(
            rnd(x), rnd(w_oihw), window_strides=(1, 1), padding=((1, 1), (1, 1)),
            dimension_numbers=("NCHW", "OIHW", "NCHW"))
        mean = jnp.mean(y, axis=(0, 2, 3), keepdims=True)
        var = jnp.mean((y - mean) ** 2, axis=(0, 2, 3), keepdims=True)
        g = gamma.reshape(1, cout, 1, 1)
        b = beta.reshape(1, cout, 1, 1)
        x = jnp.maximum((y - mean) * lax.rsqrt(var + EPS) * g + b, 0.0)
    return x


if __name__ == "__main__":
    in_channels, out_channels = 4, 8
    n, h, w = 2, 16, 16

    key = jax.random.PRNGKey(0)
    kx, kp = jax.random.split(key)
    x = jax.random.normal(kx, (n, in_channels, h, w), jnp.float32)
    params = _init_params(kp, in_channels, out_channels)

    out = jax.block_until_ready(triple_conv_up(x, params))
    assert out.shape == (n, out_channels, h, w), out.shape
    assert bool(jnp.all(jnp.isfinite(out)))

    # Tight check vs. a reference that applies the same bf16 operand rounding
    # (remaining difference is accumulation order only).
    ref_bf16 = jax.block_until_ready(_reference(x, params, emulate_bf16=True))
    err_bf16 = float(jnp.max(jnp.abs(out - ref_bf16)))
    assert jnp.allclose(out, ref_bf16, rtol=5e-3, atol=5e-3), err_bf16

    # Sanity check vs. the pure-f32 reference (bf16 MXU operands bound the gap).
    ref_f32 = jax.block_until_ready(_reference(x, params, emulate_bf16=False))
    err_f32 = float(jnp.max(jnp.abs(out - ref_f32)))
    assert jnp.allclose(out, ref_f32, rtol=5e-2, atol=5e-2), err_f32

    print("KERNEL_OK")
</pallas_src>

<mosaic_0001>
module attributes {stable_mosaic.version = 11 : i64} {
  func.func @_conv_stats_kernel(%arg0: i32, %arg1: memref<1x4x342xbf16, #tpu.memory_space<vmem>>, %arg2: memref<4x36xbf16, #tpu.memory_space<vmem>>, %arg3: memref<1x288xf32, #tpu.memory_space<vmem>>, %arg4: memref<1x4x288xf32, #tpu.memory_space<vmem>>, %arg5: memref<1x4x2xf32, #tpu.memory_space<vmem>>, %arg6: memref<36x288xbf16, #tpu.memory_space<vmem>>) attributes {dimension_semantics = [#tpu.dimension_semantics<parallel>], iteration_bounds = array<i64: 2>, scalar_prefetch = 0 : i64, scratch_operands = 1 : i64, tpu.core_type = #tpu.core_type<tc>, window_params = [{transform_indices = @transform_0, window_bounds = array<i64: 1, 4, 342>}, {pipeline_mode = #tpu.pipeline_mode<synchronous>, transform_indices = @transform_1, window_bounds = array<i64: 4, 36>}, {pipeline_mode = #tpu.pipeline_mode<synchronous>, transform_indices = @transform_2, window_bounds = array<i64: 1, 288>}, {transform_indices = @transform_3, window_bounds = array<i64: 1, 4, 288>}, {transform_indices = @transform_4, window_bounds = array<i64: 1, 4, 2>}]} {
    %c0 = arith.constant 0 : index
    %c0_0 = arith.constant 0 : index
    %c0_1 = arith.constant 0 : index
    %0 = vector.load %arg1[%c0, %c0_0, %c0_1] : memref<1x4x342xbf16, #tpu.memory_space<vmem>>, vector<1x4x288xbf16>
    %1 = vector.shape_cast %0 : vector<1x4x288xbf16> to vector<4x288xbf16>
    %c0_2 = arith.constant 0 : index
    %c0_3 = arith.constant 0 : index
    %2 = vector.load %arg6[%c0_2, %c0_3] : memref<36x288xbf16, #tpu.memory_space<vmem>>, vector<4x288xbf16>
    tpu.vector_store %arg6[%c0_2, %c0_3], %1 {strides = array<i32>} : memref<36x288xbf16, #tpu.memory_space<vmem>>, vector<4x288xbf16>,
    %c0_4 = arith.constant 0 : index
    %c0_5 = arith.constant 0 : index
    %c1 = arith.constant 1 : index
    %3 = vector.load %arg1[%c0_4, %c0_5, %c1] : memref<1x4x342xbf16, #tpu.memory_space<vmem>>, vector<1x4x288xbf16>
    %4 = vector.shape_cast %3 : vector<1x4x288xbf16> to vector<4x288xbf16>
    %c4 = arith.constant 4 : index
    %c0_6 = arith.constant 0 : index
    %5 = vector.load %arg6[%c4, %c0_6] : memref<36x288xbf16, #tpu.memory_space<vmem>>, vector<4x288xbf16>
    tpu.vector_store %arg6[%c4, %c0_6], %4 {strides = array<i32>} : memref<36x288xbf16, #tpu.memory_space<vmem>>, vector<4x288xbf16>,
    %c0_7 = arith.constant 0 : index
    %c0_8 = arith.constant 0 : index
    %c2 = arith.constant 2 : index
    %6 = vector.load %arg1[%c0_7, %c0_8, %c2] : memref<1x4x342xbf16, #tpu.memory_space<vmem>>, vector<1x4x288xbf16>
    %7 = vector.shape_cast %6 : vector<1x4x288xbf16> to vector<4x288xbf16>
    %c8 = arith.constant 8 : index
    %c0_9 = arith.constant 0 : index
    %8 = vector.load %arg6[%c8, %c0_9] : memref<36x288xbf16, #tpu.memory_space<vmem>>, vector<4x288xbf16>
    tpu.vector_store %arg6[%c8, %c0_9], %7 {strides = array<i32>} : memref<36x288xbf16, #tpu.memory_space<vmem>>, vector<4x288xbf16>,
    %c0_10 = arith.constant 0 : index
    %c0_11 = arith.constant 0 : index
    %c18 = arith.constant 18 : index
    %9 = vector.load %arg1[%c0_10, %c0_11, %c18] : memref<1x4x342xbf16, #tpu.memory_space<vmem>>, vector<1x4x288xbf16>
    %10 = vector.shape_cast %9 : vector<1x4x288xbf16> to vector<4x288xbf16>
    %c12 = arith.constant 12 : index
    %c0_12 = arith.constant 0 : index
    %11 = vector.load %arg6[%c12, %c0_12] : memref<36x288xbf16, #tpu.memory_space<vmem>>, vector<4x288xbf16>
    tpu.vector_store %arg6[%c12, %c0_12], %10 {strides = array<i32>} : memref<36x288xbf16, #tpu.memory_space<vmem>>, vector<4x288xbf16>,
    %c0_13 = arith.constant 0 : index
    %c0_14 = arith.constant 0 : index
    %c19 = arith.constant 19 : index
    %12 = vector.load %arg1[%c0_13, %c0_14, %c19] : memref<1x4x342xbf16, #tpu.memory_space<vmem>>, vector<1x4x288xbf16>
    %13 = vector.shape_cast %12 : vector<1x4x288xbf16> to vector<4x288xbf16>
    %c16 = arith.constant 16 : index
    %c0_15 = arith.constant 0 : index
    %14 = vector.load %arg6[%c16, %c0_15] : memref<36x288xbf16, #tpu.memory_space<vmem>>, vector<4x288xbf16>
    tpu.vector_store %arg6[%c16, %c0_15], %13 {strides = array<i32>} : memref<36x288xbf16, #tpu.memory_space<vmem>>, vector<4x288xbf16>,
    %c0_16 = arith.constant 0 : index
    %c0_17 = arith.constant 0 : index
    %c20 = arith.constant 20 : index
    %15 = vector.load %arg1[%c0_16, %c0_17, %c20] : memref<1x4x342xbf16, #tpu.memory_space<vmem>>, vector<1x4x288xbf16>
    %16 = vector.shape_cast %15 : vector<1x4x288xbf16> to vector<4x288xbf16>
    %c20_18 = arith.constant 20 : index
    %c0_19 = arith.constant 0 : index
    %17 = vector.load %arg6[%c20_18, %c0_19] : memref<36x288xbf16, #tpu.memory_space<vmem>>, vector<4x288xbf16>
    tpu.vector_store %arg6[%c20_18, %c0_19], %16 {strides = array<i32>} : memref<36x288xbf16, #tpu.memory_space<vmem>>, vector<4x288xbf16>,
    %c0_20 = arith.constant 0 : index
    %c0_21 = arith.constant 0 : index
    %c36 = arith.constant 36 : index
    %18 = vector.load %arg1[%c0_20, %c0_21, %c36] : memref<1x4x342xbf16, #tpu.memory_space<vmem>>, vector<1x4x288xbf16>
    %19 = vector.shape_cast %18 : vector<1x4x288xbf16> to vector<4x288xbf16>
    %c24 = arith.constant 24 : index
    %c0_22 = arith.constant 0 : index
    %20 = vector.load %arg6[%c24, %c0_22] : memref<36x288xbf16, #tpu.memory_space<vmem>>, vector<4x288xbf16>
    tpu.vector_store %arg6[%c24, %c0_22], %19 {strides = array<i32>} : memref<36x288xbf16, #tpu.memory_space<vmem>>, vector<4x288xbf16>,
    %c0_23 = arith.constant 0 : index
    %c0_24 = arith.constant 0 : index
    %c37 = arith.constant 37 : index
    %21 = vector.load %arg1[%c0_23, %c0_24, %c37] : memref<1x4x342xbf16, #tpu.memory_space<vmem>>, vector<1x4x288xbf16>
    %22 = vector.shape_cast %21 : vector<1x4x288xbf16> to vector<4x288xbf16>
    %c28 = arith.constant 28 : index
    %c0_25 = arith.constant 0 : index
    %23 = vector.load %arg6[%c28, %c0_25] : memref<36x288xbf16, #tpu.memory_space<vmem>>, vector<4x288xbf16>
    tpu.vector_store %arg6[%c28, %c0_25], %22 {strides = array<i32>} : memref<36x288xbf16, #tpu.memory_space<vmem>>, vector<4x288xbf16>,
    %c0_26 = arith.constant 0 : index
    %c0_27 = arith.constant 0 : index
    %c38 = arith.constant 38 : index
    %24 = vector.load %arg1[%c0_26, %c0_27, %c38] : memref<1x4x342xbf16, #tpu.memory_space<vmem>>, vector<1x4x288xbf16>
    %25 = vector.shape_cast %24 : vector<1x4x288xbf16> to vector<4x288xbf16>
    %c32 = arith.constant 32 : index
    %c0_28 = arith.constant 0 : index
    %26 = vector.load %arg6[%c32, %c0_28] : memref<36x288xbf16, #tpu.memory_space<vmem>>, vector<4x288xbf16>
    tpu.vector_store %arg6[%c32, %c0_28], %25 {strides = array<i32>} : memref<36x288xbf16, #tpu.memory_space<vmem>>, vector<4x288xbf16>,
    %c0_29 = arith.constant 0 : index
    %c0_30 = arith.constant 0 : index
    %27 = vector.load %arg2[%c0_29, %c0_30] : memref<4x36xbf16, #tpu.memory_space<vmem>>, vector<4x36xbf16>
    %c0_31 = arith.constant 0 : index
    %c0_32 = arith.constant 0 : index
    %28 = vector.load %arg6[%c0_31, %c0_32] : memref<36x288xbf16, #tpu.memory_space<vmem>>, vector<36x288xbf16>
    %cst = arith.constant dense<0.000000e+00> : vector<4x288xf32>
    %29 = tpu.matmul %27, %28, %cst {dimension_numbers = #tpu.dot_dimension_numbers<[1], [0], [0], [1], [0, 0, 1, 1], [], []>} : vector<4x36xbf16>, vector<36x288xbf16>, vector<4x288xf32> -> vector<4x288xf32>
    %c0_33 = arith.constant 0 : index
    %c0_34 = arith.constant 0 : index
    %c0_35 = arith.constant 0 : index
    %30 = vector.load %arg4[%c0_33, %c0_34, %c0_35] : memref<1x4x288xf32, #tpu.memory_space<vmem>>, vector<1x4x288xf32>
    %31 = vector.shape_cast %30 : vector<1x4x288xf32> to vector<4x288xf32>
    %32 = vector.shape_cast %29 : vector<4x288xf32> to vector<1x4x288xf32>
    tpu.vector_store %arg4[%c0_33, %c0_34, %c0_35], %32 {strides = array<i32>} : memref<1x4x288xf32, #tpu.memory_space<vmem>>, vector<1x4x288xf32>,
    %c0_36 = arith.constant 0 : index
    %c0_37 = arith.constant 0 : index
    %33 = vector.load %arg3[%c0_36, %c0_37] : memref<1x288xf32, #tpu.memory_space<vmem>>, vector<1x288xf32>
    %34 = vector.broadcast %33 : vector<1x288xf32> to vector<4x288xf32>
    %35 = arith.mulf %29, %34 : vector<4x288xf32>
    %cst_38 = arith.constant dense<0.000000e+00> : vector<4xf32>
    %36 = vector.multi_reduction <add>, %35, %cst_38 [1] : vector<4x288xf32> to vector<4xf32>
    %37 = vector.shape_cast %36 : vector<4xf32> to vector<4x1xf32>
    %c0_39 = arith.constant 0 : index
    %c0_40 = arith.constant 0 : index
    %c0_41 = arith.constant 0 : index
    %38 = vector.load %arg5[%c0_39, %c0_40, %c0_41] : memref<1x4x2xf32, #tpu.memory_space<vmem>>, vector<1x4x1xf32>
    %39 = vector.shape_cast %38 : vector<1x4x1xf32> to vector<4x1xf32>
    %40 = vector.shape_cast %37 : vector<4x1xf32> to vector<1x4x1xf32>
    tpu.vector_store %arg5[%c0_39, %c0_40, %c0_41], %40 {strides = array<i32>} : memref<1x4x2xf32, #tpu.memory_space<vmem>>, vector<1x4x1xf32>,
    %41 = arith.mulf %35, %35 : vector<4x288xf32>
    %cst_42 = arith.constant dense<0.000000e+00> : vector<4xf32>
    %42 = vector.multi_reduction <add>, %41, %cst_42 [1] : vector<4x288xf32> to vector<4xf32>
    %43 = vector.shape_cast %42 : vector<4xf32> to vector<4x1xf32>
    %c0_43 = arith.constant 0 : index
    %c0_44 = arith.constant 0 : index
    %c1_45 = arith.constant 1 : index
    %44 = vector.load %arg5[%c0_43, %c0_44, %c1_45] : memref<1x4x2xf32, #tpu.memory_space<vmem>>, vector<1x4x1xf32>
    %45 = vector.shape_cast %44 : vector<1x4x1xf32> to vector<4x1xf32>
    %46 = vector.shape_cast %43 : vector<4x1xf32> to vector<1x4x1xf32>
    tpu.vector_store %arg5[%c0_43, %c0_44, %c1_45], %46 {strides = array<i32>} : memref<1x4x2xf32, #tpu.memory_space<vmem>>, vector<1x4x1xf32>,
    return
  }
  func.func @transform_0(%arg0: i32) -> (i32, i32, i32) {
    %c0_i32 = arith.constant 0 : i32
    %c0_i32_0 = arith.constant 0 : i32
    %c0_i32_1 = arith.constant 0 : i32
    return %arg0, %c0_i32, %c0_i32_0 : i32, i32, i32
  }
  func.func @transform_1(%arg0: i32) -> (i32, i32) {
    %c0_i32 = arith.constant 0 : i32
    %c0_i32_0 = arith.constant 0 : i32
    %c0_i32_1 = arith.constant 0 : i32
    return %c0_i32, %c0_i32_0 : i32, i32
  }
  func.func @transform_2(%arg0: i32) -> (i32, i32) {
    %c0_i32 = arith.constant 0 : i32
    %c0_i32_0 = arith.constant 0 : i32
    %c0_i32_1 = arith.constant 0 : i32
    return %c0_i32, %c0_i32_0 : i32, i32
  }
  func.func @transform_3(%arg0: i32) -> (i32, i32, i32) {
    %c0_i32 = arith.constant 0 : i32
    %c0_i32_0 = arith.constant 0 : i32
    %c0_i32_1 = arith.constant 0 : i32
    return %arg0, %c0_i32, %c0_i32_0 : i32, i32, i32
  }
  func.func @transform_4(%arg0: i32) -> (i32, i32, i32) {
    %c0_i32 = arith.constant 0 : i32
    %c0_i32_0 = arith.constant 0 : i32
    %c0_i32_1 = arith.constant 0 : i32
    return %arg0, %c0_i32, %c0_i32_0 : i32, i32, i32
  }
}

module attributes {stable_mosaic.version = 11 : i64} {
  func.func @_affine_relu_kernel(%arg0: i32, %arg1: memref<1x4x288xf32, #tpu.memory_space<vmem>>, %arg2: memref<4x1xf32, #tpu.memory_space<vmem>>, %arg3: memref<4x1xf32, #tpu.memory_space<vmem>>, %arg4: memref<1x4x288xbf16, #tpu.memory_space<vmem>>) attributes {dimension_semantics = [#tpu.dimension_semantics<parallel>], iteration_bounds = array<i64: 2>, scalar_prefetch = 0 : i64, scratch_operands = 0 : i64, tpu.core_type = #tpu.core_type<tc>, window_params = [{transform_indices = @transform_0, window_bounds = array<i64: 1, 4, 288>}, {pipeline_mode = #tpu.pipeline_mode<synchronous>, transform_indices = @transform_1, window_bounds = array<i64: 4, 1>}, {pipeline_mode = #tpu.pipeline_mode<synchronous>, transform_indices = @transform_2, window_bounds = array<i64: 4, 1>}, {transform_indices = @transform_3, window_bounds = array<i64: 1, 4, 288>}]} {
    %c0 = arith.constant 0 : index
    %c0_0 = arith.constant 0 : index
    %c0_1 = arith.constant 0 : index
    %0 = vector.load %arg1[%c0, %c0_0, %c0_1] : memref<1x4x288xf32, #tpu.memory_space<vmem>>, vector<1x4x288xf32>
    %1 = vector.shape_cast %0 : vector<1x4x288xf32> to vector<4x288xf32>
    %c0_2 = arith.constant 0 : index
    %c0_3 = arith.constant 0 : index
    %2 = vector.load %arg2[%c0_2, %c0_3] : memref<4x1xf32, #tpu.memory_space<vmem>>, vector<4x1xf32>
    %3 = vector.broadcast %2 : vector<4x1xf32> to vector<4x288xf32>
    %4 = arith.mulf %1, %3 : vector<4x288xf32>
    %c0_4 = arith.constant 0 : index
    %c0_5 = arith.constant 0 : index
    %5 = vector.load %arg3[%c0_4, %c0_5] : memref<4x1xf32, #tpu.memory_space<vmem>>, vector<4x1xf32>
    %6 = vector.broadcast %5 : vector<4x1xf32> to vector<4x288xf32>
    %7 = arith.addf %4, %6 : vector<4x288xf32>
    %cst = arith.constant 0.000000e+00 : f32
    %8 = vector.broadcast %cst : f32 to vector<4x288xf32>
    %9 = arith.maximumf %7, %8 : vector<4x288xf32>
    %10 = arith.truncf %9 : vector<4x288xf32> to vector<4x288xbf16>
    %c0_6 = arith.constant 0 : index
    %c0_7 = arith.constant 0 : index
    %c0_8 = arith.constant 0 : index
    %11 = vector.load %arg4[%c0_6, %c0_7, %c0_8] : memref<1x4x288xbf16, #tpu.memory_space<vmem>>, vector<1x4x288xbf16>
    %12 = vector.shape_cast %11 : vector<1x4x288xbf16> to vector<4x288xbf16>
    %13 = vector.shape_cast %10 : vector<4x288xbf16> to vector<1x4x288xbf16>
    tpu.vector_store %arg4[%c0_6, %c0_7, %c0_8], %13 {strides = array<i32>} : memref<1x4x288xbf16, #tpu.memory_space<vmem>>, vector<1x4x288xbf16>,
    return
  }
  func.func @transform_0(%arg0: i32) -> (i32, i32, i32) {
    %c0_i32 = arith.constant 0 : i32
    %c0_i32_0 = arith.constant 0 : i32
    %c0_i32_1 = arith.constant 0 : i32
    return %arg0, %c0_i32, %c0_i32_0 : i32, i32, i32
  }
  func.func @transform_1(%arg0: i32) -> (i32, i32) {
    %c0_i32 = arith.constant 0 : i32
    %c0_i32_0 = arith.constant 0 : i32
    %c0_i32_1 = arith.constant 0 : i32
    return %c0_i32, %c0_i32_0 : i32, i32
  }
  func.func @transform_2(%arg0: i32) -> (i32, i32) {
    %c0_i32 = arith.constant 0 : i32
    %c0_i32_0 = arith.constant 0 : i32
    %c0_i32_1 = arith.constant 0 : i32
    return %c0_i32, %c0_i32_0 : i32, i32
  }
  func.func @transform_3(%arg0: i32) -> (i32, i32, i32) {
    %c0_i32 = arith.constant 0 : i32
    %c0_i32_0 = arith.constant 0 : i32
    %c0_i32_1 = arith.constant 0 : i32
    return %arg0, %c0_i32, %c0_i32_0 : i32, i32, i32
  }
}

module attributes {stable_mosaic.version = 11 : i64} {
  func.func @_conv_stats_kernel(%arg0: i32, %arg1: memref<1x4x342xbf16, #tpu.memory_space<vmem>>, %arg2: memref<8x36xbf16, #tpu.memory_space<vmem>>, %arg3: memref<1x288xf32, #tpu.memory_space<vmem>>, %arg4: memref<1x8x288xf32, #tpu.memory_space<vmem>>, %arg5: memref<1x8x2xf32, #tpu.memory_space<vmem>>, %arg6: memref<36x288xbf16, #tpu.memory_space<vmem>>) attributes {dimension_semantics = [#tpu.dimension_semantics<parallel>], iteration_bounds = array<i64: 2>, scalar_prefetch = 0 : i64, scratch_operands = 1 : i64, tpu.core_type = #tpu.core_type<tc>, window_params = [{transform_indices = @transform_0, window_bounds = array<i64: 1, 4, 342>}, {pipeline_mode = #tpu.pipeline_mode<synchronous>, transform_indices = @transform_1, window_bounds = array<i64: 8, 36>}, {pipeline_mode = #tpu.pipeline_mode<synchronous>, transform_indices = @transform_2, window_bounds = array<i64: 1, 288>}, {transform_indices = @transform_3, window_bounds = array<i64: 1, 8, 288>}, {transform_indices = @transform_4, window_bounds = array<i64: 1, 8, 2>}]} {
    %c0 = arith.constant 0 : index
    %c0_0 = arith.constant 0 : index
    %c0_1 = arith.constant 0 : index
    %0 = vector.load %arg1[%c0, %c0_0, %c0_1] : memref<1x4x342xbf16, #tpu.memory_space<vmem>>, vector<1x4x288xbf16>
    %1 = vector.shape_cast %0 : vector<1x4x288xbf16> to vector<4x288xbf16>
    %c0_2 = arith.constant 0 : index
    %c0_3 = arith.constant 0 : index
    %2 = vector.load %arg6[%c0_2, %c0_3] : memref<36x288xbf16, #tpu.memory_space<vmem>>, vector<4x288xbf16>
    tpu.vector_store %arg6[%c0_2, %c0_3], %1 {strides = array<i32>} : memref<36x288xbf16, #tpu.memory_space<vmem>>, vector<4x288xbf16>,
    %c0_4 = arith.constant 0 : index
    %c0_5 = arith.constant 0 : index
    %c1 = arith.constant 1 : index
    %3 = vector.load %arg1[%c0_4, %c0_5, %c1] : memref<1x4x342xbf16, #tpu.memory_space<vmem>>, vector<1x4x288xbf16>
    %4 = vector.shape_cast %3 : vector<1x4x288xbf16> to vector<4x288xbf16>
    %c4 = arith.constant 4 : index
    %c0_6 = arith.constant 0 : index
    %5 = vector.load %arg6[%c4, %c0_6] : memref<36x288xbf16, #tpu.memory_space<vmem>>, vector<4x288xbf16>
    tpu.vector_store %arg6[%c4, %c0_6], %4 {strides = array<i32>} : memref<36x288xbf16, #tpu.memory_space<vmem>>, vector<4x288xbf16>,
    %c0_7 = arith.constant 0 : index
    %c0_8 = arith.constant 0 : index
    %c2 = arith.constant 2 : index
    %6 = vector.load %arg1[%c0_7, %c0_8, %c2] : memref<1x4x342xbf16, #tpu.memory_space<vmem>>, vector<1x4x288xbf16>
    %7 = vector.shape_cast %6 : vector<1x4x288xbf16> to vector<4x288xbf16>
    %c8 = arith.constant 8 : index
    %c0_9 = arith.constant 0 : index
    %8 = vector.load %arg6[%c8, %c0_9] : memref<36x288xbf16, #tpu.memory_space<vmem>>, vector<4x288xbf16>
    tpu.vector_store %arg6[%c8, %c0_9], %7 {strides = array<i32>} : memref<36x288xbf16, #tpu.memory_space<vmem>>, vector<4x288xbf16>,
    %c0_10 = arith.constant 0 : index
    %c0_11 = arith.constant 0 : index
    %c18 = arith.constant 18 : index
    %9 = vector.load %arg1[%c0_10, %c0_11, %c18] : memref<1x4x342xbf16, #tpu.memory_space<vmem>>, vector<1x4x288xbf16>
    %10 = vector.shape_cast %9 : vector<1x4x288xbf16> to vector<4x288xbf16>
    %c12 = arith.constant 12 : index
    %c0_12 = arith.constant 0 : index
    %11 = vector.load %arg6[%c12, %c0_12] : memref<36x288xbf16, #tpu.memory_space<vmem>>, vector<4x288xbf16>
    tpu.vector_store %arg6[%c12, %c0_12], %10 {strides = array<i32>} : memref<36x288xbf16, #tpu.memory_space<vmem>>, vector<4x288xbf16>,
    %c0_13 = arith.constant 0 : index
    %c0_14 = arith.constant 0 : index
    %c19 = arith.constant 19 : index
    %12 = vector.load %arg1[%c0_13, %c0_14, %c19] : memref<1x4x342xbf16, #tpu.memory_space<vmem>>, vector<1x4x288xbf16>
    %13 = vector.shape_cast %12 : vector<1x4x288xbf16> to vector<4x288xbf16>
    %c16 = arith.constant 16 : index
    %c0_15 = arith.constant 0 : index
    %14 = vector.load %arg6[%c16, %c0_15] : memref<36x288xbf16, #tpu.memory_space<vmem>>, vector<4x288xbf16>
    tpu.vector_store %arg6[%c16, %c0_15], %13 {strides = array<i32>} : memref<36x288xbf16, #tpu.memory_space<vmem>>, vector<4x288xbf16>,
    %c0_16 = arith.constant 0 : index
    %c0_17 = arith.constant 0 : index
    %c20 = arith.constant 20 : index
    %15 = vector.load %arg1[%c0_16, %c0_17, %c20] : memref<1x4x342xbf16, #tpu.memory_space<vmem>>, vector<1x4x288xbf16>
    %16 = vector.shape_cast %15 : vector<1x4x288xbf16> to vector<4x288xbf16>
    %c20_18 = arith.constant 20 : index
    %c0_19 = arith.constant 0 : index
    %17 = vector.load %arg6[%c20_18, %c0_19] : memref<36x288xbf16, #tpu.memory_space<vmem>>, vector<4x288xbf16>
    tpu.vector_store %arg6[%c20_18, %c0_19], %16 {strides = array<i32>} : memref<36x288xbf16, #tpu.memory_space<vmem>>, vector<4x288xbf16>,
    %c0_20 = arith.constant 0 : index
    %c0_21 = arith.constant 0 : index
    %c36 = arith.constant 36 : index
    %18 = vector.load %arg1[%c0_20, %c0_21, %c36] : memref<1x4x342xbf16, #tpu.memory_space<vmem>>, vector<1x4x288xbf16>
    %19 = vector.shape_cast %18 : vector<1x4x288xbf16> to vector<4x288xbf16>
    %c24 = arith.constant 24 : index
    %c0_22 = arith.constant 0 : index
    %20 = vector.load %arg6[%c24, %c0_22] : memref<36x288xbf16, #tpu.memory_space<vmem>>, vector<4x288xbf16>
    tpu.vector_store %arg6[%c24, %c0_22], %19 {strides = array<i32>} : memref<36x288xbf16, #tpu.memory_space<vmem>>, vector<4x288xbf16>,
    %c0_23 = arith.constant 0 : index
    %c0_24 = arith.constant 0 : index
    %c37 = arith.constant 37 : index
    %21 = vector.load %arg1[%c0_23, %c0_24, %c37] : memref<1x4x342xbf16, #tpu.memory_space<vmem>>, vector<1x4x288xbf16>
    %22 = vector.shape_cast %21 : vector<1x4x288xbf16> to vector<4x288xbf16>
    %c28 = arith.constant 28 : index
    %c0_25 = arith.constant 0 : index
    %23 = vector.load %arg6[%c28, %c0_25] : memref<36x288xbf16, #tpu.memory_space<vmem>>, vector<4x288xbf16>
    tpu.vector_store %arg6[%c28, %c0_25], %22 {strides = array<i32>} : memref<36x288xbf16, #tpu.memory_space<vmem>>, vector<4x288xbf16>,
    %c0_26 = arith.constant 0 : index
    %c0_27 = arith.constant 0 : index
    %c38 = arith.constant 38 : index
    %24 = vector.load %arg1[%c0_26, %c0_27, %c38] : memref<1x4x342xbf16, #tpu.memory_space<vmem>>, vector<1x4x288xbf16>
    %25 = vector.shape_cast %24 : vector<1x4x288xbf16> to vector<4x288xbf16>
    %c32 = arith.constant 32 : index
    %c0_28 = arith.constant 0 : index
    %26 = vector.load %arg6[%c32, %c0_28] : memref<36x288xbf16, #tpu.memory_space<vmem>>, vector<4x288xbf16>
    tpu.vector_store %arg6[%c32, %c0_28], %25 {strides = array<i32>} : memref<36x288xbf16, #tpu.memory_space<vmem>>, vector<4x288xbf16>,
    %c0_29 = arith.constant 0 : index
    %c0_30 = arith.constant 0 : index
    %27 = vector.load %arg2[%c0_29, %c0_30] : memref<8x36xbf16, #tpu.memory_space<vmem>>, vector<8x36xbf16>
    %c0_31 = arith.constant 0 : index
    %c0_32 = arith.constant 0 : index
    %28 = vector.load %arg6[%c0_31, %c0_32] : memref<36x288xbf16, #tpu.memory_space<vmem>>, vector<36x288xbf16>
    %cst = arith.constant dense<0.000000e+00> : vector<8x288xf32>
    %29 = tpu.matmul %27, %28, %cst {dimension_numbers = #tpu.dot_dimension_numbers<[1], [0], [0], [1], [0, 0, 1, 1], [], []>} : vector<8x36xbf16>, vector<36x288xbf16>, vector<8x288xf32> -> vector<8x288xf32>
    %c0_33 = arith.constant 0 : index
    %c0_34 = arith.constant 0 : index
    %c0_35 = arith.constant 0 : index
    %30 = vector.load %arg4[%c0_33, %c0_34, %c0_35] : memref<1x8x288xf32, #tpu.memory_space<vmem>>, vector<1x8x288xf32>
    %31 = vector.shape_cast %30 : vector<1x8x288xf32> to vector<8x288xf32>
    %32 = vector.shape_cast %29 : vector<8x288xf32> to vector<1x8x288xf32>
    tpu.vector_store %arg4[%c0_33, %c0_34, %c0_35], %32 {strides = array<i32>} : memref<1x8x288xf32, #tpu.memory_space<vmem>>, vector<1x8x288xf32>,
    %c0_36 = arith.constant 0 : index
    %c0_37 = arith.constant 0 : index
    %33 = vector.load %arg3[%c0_36, %c0_37] : memref<1x288xf32, #tpu.memory_space<vmem>>, vector<1x288xf32>
    %34 = vector.broadcast %33 : vector<1x288xf32> to vector<8x288xf32>
    %35 = arith.mulf %29, %34 : vector<8x288xf32>
    %cst_38 = arith.constant dense<0.000000e+00> : vector<8xf32>
    %36 = vector.multi_reduction <add>, %35, %cst_38 [1] : vector<8x288xf32> to vector<8xf32>
    %37 = vector.shape_cast %36 : vector<8xf32> to vector<8x1xf32>
    %c0_39 = arith.constant 0 : index
    %c0_40 = arith.constant 0 : index
    %c0_41 = arith.constant 0 : index
    %38 = vector.load %arg5[%c0_39, %c0_40, %c0_41] : memref<1x8x2xf32, #tpu.memory_space<vmem>>, vector<1x8x1xf32>
    %39 = vector.shape_cast %38 : vector<1x8x1xf32> to vector<8x1xf32>
    %40 = vector.shape_cast %37 : vector<8x1xf32> to vector<1x8x1xf32>
    tpu.vector_store %arg5[%c0_39, %c0_40, %c0_41], %40 {strides = array<i32>} : memref<1x8x2xf32, #tpu.memory_space<vmem>>, vector<1x8x1xf32>,
    %41 = arith.mulf %35, %35 : vector<8x288xf32>
    %cst_42 = arith.constant dense<0.000000e+00> : vector<8xf32>
    %42 = vector.multi_reduction <add>, %41, %cst_42 [1] : vector<8x288xf32> to vector<8xf32>
    %43 = vector.shape_cast %42 : vector<8xf32> to vector<8x1xf32>
    %c0_43 = arith.constant 0 : index
    %c0_44 = arith.constant 0 : index
    %c1_45 = arith.constant 1 : index
    %44 = vector.load %arg5[%c0_43, %c0_44, %c1_45] : memref<1x8x2xf32, #tpu.memory_space<vmem>>, vector<1x8x1xf32>
    %45 = vector.shape_cast %44 : vector<1x8x1xf32> to vector<8x1xf32>
    %46 = vector.shape_cast %43 : vector<8x1xf32> to vector<1x8x1xf32>
    tpu.vector_store %arg5[%c0_43, %c0_44, %c1_45], %46 {strides = array<i32>} : memref<1x8x2xf32, #tpu.memory_space<vmem>>, vector<1x8x1xf32>,
    return
  }
  func.func @transform_0(%arg0: i32) -> (i32, i32, i32) {
    %c0_i32 = arith.constant 0 : i32
    %c0_i32_0 = arith.constant 0 : i32
    %c0_i32_1 = arith.constant 0 : i32
    return %arg0, %c0_i32, %c0_i32_0 : i32, i32, i32
  }
  func.func @transform_1(%arg0: i32) -> (i32, i32) {
    %c0_i32 = arith.constant 0 : i32
    %c0_i32_0 = arith.constant 0 : i32
    %c0_i32_1 = arith.constant 0 : i32
    return %c0_i32, %c0_i32_0 : i32, i32
  }
  func.func @transform_2(%arg0: i32) -> (i32, i32) {
    %c0_i32 = arith.constant 0 : i32
    %c0_i32_0 = arith.constant 0 : i32
    %c0_i32_1 = arith.constant 0 : i32
    return %c0_i32, %c0_i32_0 : i32, i32
  }
  func.func @transform_3(%arg0: i32) -> (i32, i32, i32) {
    %c0_i32 = arith.constant 0 : i32
    %c0_i32_0 = arith.constant 0 : i32
    %c0_i32_1 = arith.constant 0 : i32
    return %arg0, %c0_i32, %c0_i32_0 : i32, i32, i32
  }
  func.func @transform_4(%arg0: i32) -> (i32, i32, i32) {
    %c0_i32 = arith.constant 0 : i32
    %c0_i32_0 = arith.constant 0 : i32
    %c0_i32_1 = arith.constant 0 : i32
    return %arg0, %c0_i32, %c0_i32_0 : i32, i32, i32
  }
}

module attributes {stable_mosaic.version = 11 : i64} {
  func.func @_affine_relu_kernel(%arg0: i32, %arg1: memref<1x8x288xf32, #tpu.memory_space<vmem>>, %arg2: memref<8x1xf32, #tpu.memory_space<vmem>>, %arg3: memref<8x1xf32, #tpu.memory_space<vmem>>, %arg4: memref<1x8x288xf32, #tpu.memory_space<vmem>>) attributes {dimension_semantics = [#tpu.dimension_semantics<parallel>], iteration_bounds = array<i64: 2>, scalar_prefetch = 0 : i64, scratch_operands = 0 : i64, tpu.core_type = #tpu.core_type<tc>, window_params = [{transform_indices = @transform_0, window_bounds = array<i64: 1, 8, 288>}, {pipeline_mode = #tpu.pipeline_mode<synchronous>, transform_indices = @transform_1, window_bounds = array<i64: 8, 1>}, {pipeline_mode = #tpu.pipeline_mode<synchronous>, transform_indices = @transform_2, window_bounds = array<i64: 8, 1>}, {transform_indices = @transform_3, window_bounds = array<i64: 1, 8, 288>}]} {
    %c0 = arith.constant 0 : index
    %c0_0 = arith.constant 0 : index
    %c0_1 = arith.constant 0 : index
    %0 = vector.load %arg1[%c0, %c0_0, %c0_1] : memref<1x8x288xf32, #tpu.memory_space<vmem>>, vector<1x8x288xf32>
    %1 = vector.shape_cast %0 : vector<1x8x288xf32> to vector<8x288xf32>
    %c0_2 = arith.constant 0 : index
    %c0_3 = arith.constant 0 : index
    %2 = vector.load %arg2[%c0_2, %c0_3] : memref<8x1xf32, #tpu.memory_space<vmem>>, vector<8x1xf32>
    %3 = vector.broadcast %2 : vector<8x1xf32> to vector<8x288xf32>
    %4 = arith.mulf %1, %3 : vector<8x288xf32>
    %c0_4 = arith.constant 0 : index
    %c0_5 = arith.constant 0 : index
    %5 = vector.load %arg3[%c0_4, %c0_5] : memref<8x1xf32, #tpu.memory_space<vmem>>, vector<8x1xf32>
    %6 = vector.broadcast %5 : vector<8x1xf32> to vector<8x288xf32>
    %7 = arith.addf %4, %6 : vector<8x288xf32>
    %cst = arith.constant 0.000000e+00 : f32
    %8 = vector.broadcast %cst : f32 to vector<8x288xf32>
    %9 = arith.maximumf %7, %8 : vector<8x288xf32>
    %c0_6 = arith.constant 0 : index
    %c0_7 = arith.constant 0 : index
    %c0_8 = arith.constant 0 : index
    %10 = vector.load %arg4[%c0_6, %c0_7, %c0_8] : memref<1x8x288xf32, #tpu.memory_space<vmem>>, vector<1x8x288xf32>
    %11 = vector.shape_cast %10 : vector<1x8x288xf32> to vector<8x288xf32>
    %12 = vector.shape_cast %9 : vector<8x288xf32> to vector<1x8x288xf32>
    tpu.vector_store %arg4[%c0_6, %c0_7, %c0_8], %12 {strides = array<i32>} : memref<1x8x288xf32, #tpu.memory_space<vmem>>, vector<1x8x288xf32>,
    return
  }
  func.func @transform_0(%arg0: i32) -> (i32, i32, i32) {
    %c0_i32 = arith.constant 0 : i32
    %c0_i32_0 = arith.constant 0 : i32
    %c0_i32_1 = arith.constant 0 : i32
    return %arg0, %c0_i32, %c0_i32_0 : i32, i32, i32
  }
  func.func @transform_1(%arg0: i32) -> (i32, i32) {
    %c0_i32 = arith.constant 0 : i32
    %c0_i32_0 = arith.constant 0 : i32
    %c0_i32_1 = arith.constant 0 : i32
    return %c0_i32, %c0_i32_0 : i32, i32
  }
  func.func @transform_2(%arg0: i32) -> (i32, i32) {
    %c0_i32 = arith.constant 0 : i32
    %c0_i32_0 = arith.constant 0 : i32
    %c0_i32_1 = arith.constant 0 : i32
    return %c0_i32, %c0_i32_0 : i32, i32
  }
  func.func @transform_3(%arg0: i32) -> (i32, i32, i32) {
    %c0_i32 = arith.constant 0 : i32
    %c0_i32_0 = arith.constant 0 : i32
    %c0_i32_1 = arith.constant 0 : i32
    return %arg0, %c0_i32, %c0_i32_0 : i32, i32, i32
  }
}

</mosaic_0001>

<bundles_post_ra>
// kernel: triple_conv_up.7
= control target key start
LH: loop header
LB: loop body
LE: loop exit
PB: predicated region body
PF: predicated region fallthrough
CT: control target
= control target key end

     0   :  { %s347_s12 = smov 0   ;;  %s374_s0 = inlined_call_operand.vmem [shape: f32[2,4,288], index: 0, kind: input, shape index: {}]   ;;  %s375_s1 = inlined_call_operand.vmem [shape: f32[4,1], index: 1, kind: input, shape index: {}]   ;;  %s376_s2 = inlined_call_operand.vmem [shape: f32[4,1], index: 2, kind: input, shape index: {}]   ;;  %s377_s3 = inlined_call_operand.vmem [shape: bf16[2,4,288], index: 3, kind: output, shape index: {}]  }
   0x1 LB: > { %s292_s13 = sadd.s32 4294967295, %s322_s12   ;;  %p296_p0 = scmp.ge.s32.totalorder %s322_s12, 1  ;;  %s322_s12 = sphi %s347_s12, %s13_s12  }
   0x2   : > { %p137_p1 = scmp.lt.s32.totalorder %s322_s12, 3 }
   0x4   : > { %p138_p2 = pnand %p296_p0, %p137_p1 }
   0x5   : > { %v173_v0 = vld [vmem:[%s375_s1] sm:$0xf] (!%p138_p2)  ;;  %v324_v1 = vmov (!%p138_p2), 0   ;;  %p161_p3 = scmp.lt.s32.totalorder (!%p138_p2), %s292_s13, 1  ;;  %v325_v3 = vmov (!%p138_p2), 839922192   ;;  %v181_v5 = vlaneseq (!%p138_p2) }
   0x6   : > { %141 = sbr.rel (%p138_p2) target bundleno = 154 (0x9a), region = 32  ;;  %315 = vset.pattern.permute.xlu0 (!%p138_p2), %v324_v1  ;;  %v188_v2 = vld [vmem:[%s376_s2] sm:$0xf] (!%p138_p2)  ;;  %v179_v4 = vunpack.c.l.s4 (!%p138_p2), %v325_v3  ;;  %v326_v13 = vmov (!%p138_p2), 1983009808   ;;  %vm231_vm0 = vcmask (!%p138_p2), 1041408  }
   0x7   : > { %176 = vperm.xlu0 (!%p138_p2), %315, %v173_v0   ;;  %v182_v7 = vshrl.u32 (!%p138_p2), %v181_v5, 7  ;;  %v216_v14 = vunpack.c.l.s4 (!%p138_p2), %v326_v13  ;;  %vm232_vm1 = vcmask (!%p138_p2), 1043458   ;;  %vm234_vm3 = vcmask (!%p138_p2), 259076  }
   0x8   : > { %v180_v6 = vunpack.c.0.s8 (!%p138_p2), %v179_v4  ;;  %vm233_vm2 = vmor (!%p138_p2), %vm232_vm1, %vm231_vm0 }
   0x9   : > { %v217_v19 = vunpack.c.0.s8 (!%p138_p2), %v216_v14  ;;  %vm235_vm4 = vmor (!%p138_p2), %vm234_vm3, %vm233_vm2 }
   0xa   : > { %v183_v8 = vsub.s32 (!%p138_p2), %v180_v6, %v182_v7 }
   0xb   : > { %191 = vperm.xlu0 (!%p138_p2), %315, %v188_v2   ;;  %v220_v24 = vsub.s32 (!%p138_p2), %v217_v19, %v182_v7 }
   0xd   : > { %s379_s13 = smov (!%p161_p3, %s292_s13), 1 }
   0xe   : > { %s302_s18 = smul.u32 12, %s379_s13 }
   0xf   : > { %s303_s22 = smul.u32 6, %s379_s13 }
  0x10   : > { %s165_s21 = scalar_lea.vmem %s374_s0, %s302_s18 }
  0x11   : > { %v171_v11 = vld [vmem:[%s165_s21] sm:$0xff]  ;;  %v172_v12 = vld [vmem:[%s165_s21 + $0x8] sm:$0xf]  ;;  %s170_s25 = scalar_lea.vmem %s377_s3, %s303_s22 }
  0x86   : > { %v177_v9 = vpop.permute.xlu0 %176 }
  0x87   : > { %v184_v10 = vrot.slane %v177_v9, %v183_v8 }
  0x89   : > { %v186_v16 = vmul.f32 %v184_v10, %v171_v11  ;;  %v187_v17 = vmul.f32 %v184_v10, %v172_v12 }
  0x8a   : > { %v192_v15 = vpop.permute.xlu0 %191 }
  0x8b   : > { %v199_v18 = vrot.slane %v192_v15, %v183_v8 }
  0x8d   : > { %v201_v20 = vadd.f32 %v199_v18, %v186_v16  ;;  %v202_v21 = vadd.f32 %v199_v18, %v187_v17 }
  0x8f   : > { %v203_v22 = vmax.f32 %v201_v20, 0.0  ;;  %v204_v23 = vmax.f32 %v202_v21, 0.0 }
  0x91   : > { %v206_v25 = vcombine.high %v203_v22, %v203_v22  ;;  %v210_v26 = vpack.c.bf16 %v204_v23, %v204_v23 }
  0x93   : > { %v299_v27 = vpack.c.bf16 %v206_v25, %v203_v22  ;;  %v228_v29 = vrot.slane %v210_v26, %v220_v24 }
  0x95   : > { %v221_v28 = vrot.slane %v299_v27, %v220_v24 }
  0x97   : > { %v229_v30 = vcombine.low %v221_v28, %v228_v29 }
  0x99   : > { %236 = vst.msk [vmem:[%s170_s25] sm:$0x3f] %vm235_vm4, %v229_v30 }
  0x9a PF: > { %s13_s12 = sadd.s32 1, %s322_s12  }
  0x9b   : > { %p10_p4 = scmp.ge.s32.totalorder %s13_s12, 4  }
  0x9d   :  { %12 = sbr.rel (!%p10_p4) target bundleno = 1 (0x1), region = 62 }

// kernel: triple_conv_up.6
= control target key start
LH: loop header
LB: loop body
LE: loop exit
PB: predicated region body
PF: predicated region fallthrough
CT: control target
= control target key end

     0   :  { %s878_s15 = smov 0   ;;  %s973_s0 = inlined_call_operand.vmem [shape: bf16[2,4,342], index: 0, kind: input, shape index: {}]   ;;  %s974_s1 = inlined_call_operand.vmem [shape: bf16[4,36], index: 1, kind: input, shape index: {}]   ;;  %s975_s2 = inlined_call_operand.vmem [shape: f32[1,288], index: 2, kind: input, shape index: {}]   ;;  %s976_s3 = inlined_call_operand.vmem [shape: f32[2,4,288], index: 3, kind: output, shape index: {0}]   ;;  %s977_s4 = inlined_call_operand.vmem [shape: f32[2,4,2], index: 4, kind: output, shape index: {1}]  }
   0x1 LB: > { %s755_s16 = sadd.s32 4294967295, %s839_s15   ;;  %p759_p0 = scmp.ge.s32.totalorder %s839_s15, 1  ;;  %s839_s15 = sphi %s878_s15, %s15_s15  }
   0x2   : > { %p165_p1 = scmp.lt.s32.totalorder %s839_s15, 3 }
   0x4   : > { %p166_p2 = pnand %p759_p0, %p165_p1 }
   0x5   : > { %p195_p3 = scmp.lt.s32.totalorder (!%p166_p2), %s755_s16, 1  ;;  %v223_v0 = vlaneseq (!%p166_p2)  ;;  %v841_v1 = vmov (!%p166_p2), 1983009808   ;;  %s842_s21 = smov (!%p166_p2), 126   ;;  %vm230_vm0 = vcmask (!%p166_p2), 254976   ;;  %v846_v24 = vmov (!%p166_p2), 0.0  }
   0x6   : > { %169 = sbr.rel (%p166_p2) target bundleno = 547 (0x223), region = 32  ;;  %v221_v2 = vunpack.c.l.s4 (!%p166_p2), %v841_v1  ;;  %s843_s22 = smov (!%p166_p2), 127   ;;  %782 = vmatprep.subr.bf16.mxu1 (!%p166_p2), %v846_v24  ;;  %v851_v42 = vmov (!%p166_p2), 0   ;;  %vm852_vm1 = vmmov (!%p166_p2), 0   ;;  %vm262_vm2 = vcmask (!%p166_p2), 257026  }
   0x7   : > { %v888_v3 = vshrl.u32 (!%p166_p2), %v223_v0, 7  ;;  %s844_s23 = smov (!%p166_p2), 110   ;;  %s845_s24 = smov (!%p166_p2), 109   ;;  %571 = vmatprep.mubr.bf16.mxu0 (!%p166_p2), %v851_v42  ;;  %788 = vmatprep.mubr.msk.bf16.mxu1 (!%p166_p2), %vm852_vm1, %v846_v24  ;;  %vm255_vm3 = vcmask (!%p166_p2), 1043456   ;;  %vm288_vm4 = vcmask (!%p166_p2), 1031168   ;;  %vm257_vm5 = vcmask (!%p166_p2), 1039360  }
   0x8   : > { %v222_v4 = vunpack.c.0.s8 (!%p166_p2), %v221_v2  ;;  %s847_s25 = smov (!%p166_p2), 108   ;;  %s848_s26 = smov (!%p166_p2), 92   ;;  %vm348_vm6 = vcmask (!%p166_p2), 891904   ;;  %vm318_vm7 = vcmask (!%p166_p2), 900096   ;;  %vm378_vm8 = vcmask (!%p166_p2), 883712  }
   0x9   : > { %s849_s27 = smov (!%p166_p2), 91   ;;  %s850_s28 = smov (!%p166_p2), 90   ;;  %vm408_vm9 = vcmask (!%p166_p2), 752640   ;;  %vm438_vm10 = vcmask (!%p166_p2), 744448   ;;  %vm468_vm11 = vcmask (!%p166_p2), 736256   ;;  %vm529_vm12 = vcmask (!%p166_p2), 1041408  }
   0xa   : > { %v892_v5 = vsub.s32 (!%p166_p2), %v222_v4, %v888_v3  ;;  %vm525_vm13 = vcmask (!%p166_p2), 293888   ;;  %vm625_vm14 = vcmask (!%p166_p2), 257024   ;;  %vm655_vm15 = vcmask (!%p166_p2), 3072  }
   0xd   : > { %s979_s16 = smov (!%p195_p3, %s755_s16), 1 }
   0xe   : > { %s792_s17 = smul.u32 6, %s979_s16  ;;  %s762_s11 = sshll.u32 %s979_s16, 2 }
   0xf   : > { %s793_s5 = smul.u32 12, %s979_s16  ;;  %s208_s14 = scalar_lea.vmem %s977_s4, %s762_s11 }
  0x10   : > { %s897_s20 = scalar_lea.vmem %s973_s0, %s792_s17 }
  0x11   : > { %v264_v6 = vld [vmem:[%s897_s20] sm:$0x3f]  ;;  %s204_s10 = scalar_lea.vmem %s976_s3, %s793_s5 }
  0x12   : > { %v232_v7 = vld [vmem:[%s897_s20] sm:$0x3f]  ;;  %v273_v9 = vrot.slane %v264_v6, %v892_v5  ;;  %v266_v12 = vcombine.high %v264_v6, %v264_v6 }
  0x13   : > { %v294_v8 = vld [vmem:[%s897_s20] sm:$0x3f]  ;;  %v248_v10 = vrot.slane %v232_v7, %v892_v5  ;;  %v234_v14 = vcombine.low %v232_v7, %v232_v7 }
  0x14   : > { %v324_v11 = vld [vmem:[%s897_s20] sm:$0x3f]  ;;  %281 = vrot.lane.b32.xlu1 %v273_v9, %s842_s21  ;;  %v310_v15 = vrot.slane %v294_v8, %v892_v5  ;;  %v280_v19 = vrot.slane %v266_v12, %v892_v5  ;;  %v296_v21 = vcombine.low %v294_v8, %v294_v8 }
  0x15   : > { %v210_v13 = vld [vmem:[%s897_s20] sm:$0x3f]  ;;  %251 = vrot.lane.b32.xlu0 %v248_v10, %s843_s22  ;;  %v333_v16 = vrot.slane %v324_v11, %v892_v5  ;;  %v326_v17 = vcombine.high %v324_v11, %v324_v11  ;;  %v241_v20 = vrot.slane %v234_v14, %v892_v5 }
  0x16   : > { %763 = vst.sshfl [vmem:[#allocation2] sm:$0xf pattern:$0x76325410] %v210_v13  ;;  %v212_v18 = vcombine.high %v210_v13, %v210_v13  ;;  %v354_v22 = vld [vmem:[%s897_s20] sm:$0x3f]  ;;  %v303_v26 = vrot.slane %v296_v21, %v892_v5 }
  0x17   : > { %v340_v25 = vrot.slane %v326_v17, %v892_v5  ;;  %v356_v27 = vcombine.low %v354_v22, %v354_v22  ;;  %v384_v28 = vld [vmem:[%s897_s20] sm:$0x3f]  ;;  %v370_v29 = vrot.slane %v354_v22, %v892_v5 }
  0x18   : > { %313 = vrot.lane.b32.xlu1 %v310_v15, %s844_s23  ;;  %v226_v23 = vrot.slane %v212_v18, %v892_v5  ;;  %v386_v31 = vcombine.high %v384_v28, %v384_v28  ;;  %v414_v32 = vld [vmem:[%s897_s20] sm:$0x3f]  ;;  %v393_v34 = vrot.slane %v384_v28, %v892_v5 }
  0x19   : > { %341 = vrot.lane.b32.xlu0 %v333_v16, %s845_s24  ;;  %v363_v30 = vrot.slane %v356_v27, %v892_v5  ;;  %v416_v35 = vcombine.low %v414_v32, %v414_v32  ;;  %v444_v36 = vld [vmem:[%s897_s20] sm:$0x3f]  ;;  %v430_v37 = vrot.slane %v414_v32, %v892_v5 }
  0x1a   : > { %231 = vst.msk [vmem:[#allocation2 + $0x8] sm:$0x3] %vm230_vm0, %v226_v23  ;;  %v400_v33 = vrot.slane %v386_v31, %v892_v5  ;;  %v446_v39 = vcombine.high %v444_v36, %v444_v36  ;;  %v453_v41 = vrot.slane %v444_v36, %v892_v5 }
  0x1b   : > { %v423_v38 = vrot.slane %v416_v35, %v892_v5 }
  0x1c   : > { %283 = vrot.lane.b32.xlu1 %v280_v19, %s842_s21  ;;  %v460_v40 = vrot.slane %v446_v39, %v892_v5 }
  0x1d   : > { %249 = vrot.lane.b32.xlu0 %v241_v20, %s843_s22 }
  0x20   : > { %343 = vrot.lane.b32.xlu1 %v340_v25, %s845_s24 }
  0x21   : > { %311 = vrot.lane.b32.xlu0 %v303_v26, %s844_s23 }
  0x24   : > { %373 = vrot.lane.b32.xlu1 %v370_v29, %s847_s25 }
  0x25   : > { %371 = vrot.lane.b32.xlu0 %v363_v30, %s847_s25 }
  0x28   : > { %403 = vrot.lane.b32.xlu1 %v400_v33, %s848_s26 }
  0x29   : > { %401 = vrot.lane.b32.xlu0 %v393_v34, %s848_s26 }
  0x2c   : > { %433 = vrot.lane.b32.xlu1 %v430_v37, %s849_s27 }
  0x2d   : > { %431 = vrot.lane.b32.xlu0 %v423_v38, %s849_s27 }
  0x30   : > { %463 = vrot.lane.b32.xlu1 %v460_v40, %s850_s28  ;;  %v474_v40 = vld [vmem:[%s974_s1] sm:$0x3] }
  0x31   : > { %461 = vrot.lane.b32.xlu0 %v453_v41, %s850_s28 }
  0x86   : > { %v282_v43 = vpop.permute.xlu1 %281 }
  0x87   : > { %v252_v44 = vpop.permute.xlu0 %251  ;;  %v285_v49 = vrot.slane %v282_v43, 4 }
  0x88   : > { %263 = vst.msk [vmem:[#allocation2 + $0x8] sm:$0xc] %vm262_vm2, %v252_v44  ;;  %v254_v50 = vrot.slane %v252_v44, 4  ;;  %v627_v44 = vld [vmem:[%s975_s2] sm:$0x7] }
  0x8a   : > { %v314_v45 = vpop.permute.xlu1 %313 }
  0x8b   : > { %v342_v46 = vpop.permute.xlu0 %341  ;;  %323 = vst.msk [vmem:[#allocation2 + $0x14] sm:$0xc] %vm262_vm2, %v314_v45  ;;  %v316_v59 = vrot.slane %v314_v45, 4  ;;  %v631_v45 = vsub.s32 0, %v888_v3 }
  0x8c   : > { %v345_v60 = vrot.slane %v342_v46, 4 }
  0x8e   : > { %v284_v47 = vpop.permute.xlu1 %283 }
  0x8f   : > { %v250_v48 = vpop.permute.xlu0 %249  ;;  %v286_v51 = vrot.slane %v284_v47, 4  ;;  %293 = vst.msk [vmem:[#allocation2 + $0x14] sm:$0x3] %vm230_vm0, %v284_v47  ;;  %v635_v47 = vsub.s32 1, %v888_v3 }
  0x90   : > { %v253_v52 = vrot.slane %v250_v48, 4 }
  0x91   : > { %v287_v53 = vsel %vm255_vm3, %v285_v49, %v286_v51  ;;  %v632_v49 = vrot.slane %v627_v44, %v631_v45 }
  0x92   : > { %v256_v54 = vsel %vm255_vm3, %v253_v52, %v254_v50  ;;  %v289_v55 = vsel %vm288_vm4, %v282_v43, %v287_v53  ;;  %v344_v57 = vpop.permute.xlu1 %343  ;;  %v636_v52 = vrot.slane %v627_v44, %v635_v47 }
  0x93   : > { %v258_v56 = vsel %vm257_vm5, %v250_v48, %v256_v54  ;;  %v312_v58 = vpop.permute.xlu0 %311  ;;  %292 = vst [vmem:[#allocation2 + $0xc] sm:$0x33] %v289_v55  ;;  %v346_v61 = vrot.slane %v344_v57, 4  ;;  %353 = vst.msk [vmem:[#allocation2 + $0x20] sm:$0x3] %vm230_vm0, %v344_v57 }
  0x94   : > { %261 = vst [vmem:[#allocation2] sm:$0xcc] %v258_v56  ;;  %v315_v62 = vrot.slane %v312_v58, 4 }
  0x95   : > { %v347_v63 = vsel %vm255_vm3, %v345_v60, %v346_v61 }
  0x96   : > { %v317_v0 = vsel %vm255_vm3, %v315_v62, %v316_v59  ;;  %v349_v1 = vsel %vm348_vm6, %v342_v46, %v347_v63  ;;  %v374_v4 = vpop.permute.xlu1 %373  ;;  %v823_v6 = vld [vmem:[#allocation2 + $0x8] ss:$12 sps:$4 sm:$0xff]  }
  0x97   : > { %v319_v2 = vsel %vm318_vm7, %v312_v58, %v317_v0  ;;  %v372_v5 = vpop.permute.xlu0 %371  ;;  %352 = vst [vmem:[#allocation2 + $0x18] sm:$0x33] %v349_v1  ;;  %v376_v7 = vrot.slane %v374_v4, 4  ;;  %383 = vst.msk [vmem:[#allocation2 + $0x20] sm:$0xc] %vm262_vm2, %v374_v4  ;;  %783 = vmatpush3.bf16.msra.mxu1 %v823_v6 }
  0x98   : > { %322 = vst [vmem:[#allocation2 + $0xc] sm:$0xcc] %v319_v2  ;;  %v375_v8 = vrot.slane %v372_v5, 4  ;;  %784 = vmatprep.subr.bf16.mxu1 %v846_v24 }
  0x9a   : > { %v377_v9 = vsel %vm255_vm3, %v375_v8, %v376_v7  ;;  %v404_v11 = vpop.permute.xlu1 %403 }
  0x9b   : > { %v379_v10 = vsel %vm378_vm8, %v372_v5, %v377_v9  ;;  %v402_v12 = vpop.permute.xlu0 %401  ;;  %v406_v13 = vrot.slane %v404_v11, 4  ;;  %413 = vst.msk [vmem:[#allocation2 + $0x2c] sm:$0x3] %vm230_vm0, %v404_v11  ;;  %v475_v16 = vld [vmem:[#allocation2] sm:$0xff] }
  0x9c   : > { %382 = vst [vmem:[#allocation2 + $0x18] sm:$0xcc] %v379_v10  ;;  %v405_v14 = vrot.slane %v402_v12, 4 }
  0x9e   : > { %v407_v15 = vsel %vm255_vm3, %v405_v14, %v406_v13  ;;  %v434_v18 = vpop.permute.xlu1 %433 }
  0x9f   : > { %v409_v17 = vsel %vm408_vm9, %v402_v12, %v407_v15  ;;  %v432_v19 = vpop.permute.xlu0 %431  ;;  %v477_v20 = vld [vmem:[#allocation2 + $0xc] sm:$0xff]  ;;  %v436_v22 = vrot.slane %v434_v18, 4  ;;  %443 = vst.msk [vmem:[#allocation2 + $0x2c] sm:$0xc] %vm262_vm2, %v434_v18 }
  0xa0   : > { %v824_v21 = vld [vmem:[#allocation2 + $0x4] ss:$12 sps:$4 sm:$0xff]   ;;  %412 = vst [vmem:[#allocation2 + $0x24] sm:$0x33] %v409_v17  ;;  %v435_v23 = vrot.slane %v432_v19, 4  ;;  %v764_v25 = vcombine.low %v475_v16, %v477_v20 }
  0xa1   : > { %539 = vmatprep.subr.bf16.mxu0 %v824_v21 }
  0xa2   : > { %v437_v26 = vsel %vm255_vm3, %v435_v23, %v436_v22  ;;  %540 = vmatpush1.bf16.msra.mxu0 %v764_v25  ;;  %v464_v28 = vpop.permute.xlu1 %463 }
  0xa3   : > { %v439_v27 = vsel %vm438_vm10, %v432_v19, %v437_v26  ;;  %v462_v29 = vpop.permute.xlu0 %461  ;;  %v466_v30 = vrot.slane %v464_v28, 4  ;;  %473 = vst.msk [vmem:[#allocation2 + $0x38] sm:$0x3] %vm230_vm0, %v464_v28  ;;  %vm667_vm0 = vcmask 11272  }
  0xa4   : > { %442 = vst [vmem:[#allocation2 + $0x24] sm:$0xcc] %v439_v27  ;;  %v465_v31 = vrot.slane %v462_v29, 4 }
  0xa6   : > { %v467_v32 = vsel %vm255_vm3, %v465_v31, %v466_v30  ;;  %v826_v34 = vld [vmem:[#allocation2 + $0x20] ss:$12 sps:$4 sm:$0xff]  }
  0xa7   : > { %v469_v33 = vsel %vm468_vm11, %v462_v29, %v467_v32  ;;  %785 = vmatpush3.bf16.msra.mxu1 %v826_v34 }
  0xa8   : > { %472 = vst [vmem:[#allocation2 + $0x30] sm:$0x33] %v469_v33  ;;  %786 = vmatprep.subr.bf16.mxu1 %v846_v24  ;;  %v639_v24 = vsub.s32 2, %v888_v3 }
  0xaa   : > { %v830_v37 = vld [vmem:[#allocation2 + $0x38] ss:$0 sps:$4 sm:$0x33]   ;;  %v640_v46 = vrot.slane %v627_v44, %v639_v24 }
  0xab   : > { %v827_v35 = vld [vmem:[#allocation2 + $0x1c] ss:$12 sps:$4 sm:$0xff]   ;;  %v829_v36 = vld [vmem:[#allocation2 + $0x18] ss:$12 sps:$4 sm:$0xff]   ;;  %v537_v38 = vsel %vm529_vm12, %v830_v37, 0 }
  0xac   : > { %541 = vmatprep.subr.bf16.mxu0 %v827_v35  ;;  %787 = vmatpush3.bf16.msra.mxu1 %v537_v38 }
  0xad   : > { %542 = vmatpush1.bf16.msra.mxu0 %v829_v36 }
  0xaf   : > { %v483_v39 = vld [vmem:[#allocation2 + $0x30] sm:$0x33]  ;;  %789 = vmatmul.mubr.msk.bf16.vlgmr.msra.gmra.mrb[0].mxu1 %vm525_vm13, %v474_v40 }
  0xb0   : > { %v771_v41 = vcombine.high %v483_v39, %v483_v39  ;;  %v770_v42 = vcombine.low %v483_v39, %v483_v39 }
  0xb2   : > { %773 = vmatprep.subr.msk.bf16.mxu0 %vm529_vm12, %v771_v41  ;;  %v531_v43 = vsel %vm529_vm12, %v770_v42, 0 }
  0xb3   : > { %544 = vmatpush1.bf16.msra.mxu0 %v531_v43 }
  0xb6   : > { %774 = vmatmul.mubr.msk.bf16.vlgmr.msra.gmra.mrb[0].mxu0 %vm525_vm13, %v474_v40 }
 0x182   : > { %v614_v48 = vpop.f32.mrb[0].mxu1 }
 0x183   : > { %626 = vst.msk [vmem:[%s204_s10 + $0x8] sm:$0xf] %vm625_vm14, %v614_v48  ;;  %v790_v50 = vpop.f32.mrb[1].mxu1  ;;  %v646_v51 = vmul.f32 %v640_v46, %v614_v48 }
 0x184   : > { %v617_v53 = vpop.f32.mrb[2].mxu1 }
 0x185   : > { %v791_v54 = vpop.f32.mrb[3].mxu1  ;;  %v659_v58 = vmul.f32 %v646_v51, %v646_v51  ;;  %v651_v2 = vsel %vm625_vm14, %v646_v51, 0.0 }
 0x187   : > { %v663_v7 = vsel %vm625_vm14, %v659_v58, 0.0 }
 0x189   : > { %v573_v55 = vpop.f32.mrb[0].mxu0 }
 0x18a   : > { %v644_v56 = vmul.f32 %v632_v49, %v573_v55  ;;  %v575_v57 = vpop.f32.mrb[1].mxu0 }
 0x18b   : > { %v622_v59 = vcombine.low %v573_v55, %v575_v57  ;;  %v645_v60 = vmul.f32 %v636_v52, %v575_v57  ;;  %v577_v61 = vpop.f32.mrb[2].mxu0 }
 0x18c   : > { %v648_v62 = vsel %vm255_vm3, %v644_v56, 0.0  ;;  %v657_v3 = vmul.f32 %v644_v56, %v644_v56  ;;  %v578_v63 = vpop.f32.mrb[3].mxu0 }
 0x18d   : > { %624 = vst [vmem:[%s204_s10] sm:$0xff] %v622_v59  ;;  %v649_v0 = vsel %vm255_vm3, %v645_v60, 0.0  ;;  %v658_v1 = vmul.f32 %v645_v60, %v645_v60 }
 0x18e   : > { %v650_v4 = vadd.f32 %v649_v0, %v648_v62  ;;  %v660_v5 = vsel %vm255_vm3, %v657_v3, 0.0 }
 0x18f   : > { %v661_v6 = vsel %vm255_vm3, %v658_v1, 0.0 }
 0x190   : > { %v652_v8 = vadd.f32 %v651_v2, %v650_v4  ;;  %v662_v9 = vadd.f32 %v661_v6, %v660_v5 }
 0x192   : > { %653 = vadd.xlane.f32.xlu0 %v652_v8  ;;  %v664_v10 = vadd.f32 %v663_v7, %v662_v9 }
 0x194   : > { %665 = vadd.xlane.f32.xlu1 %v664_v10 }
 0x21f   : > { %v654_v11 = vpop.xlane.xlu0 %653 }
 0x220   : > { %656 = vst.msk [vmem:[%s208_s14] sm:$0xf] %vm655_vm15, %v654_v11 }
 0x221   : > { %v666_v12 = vpop.xlane.xlu1 %665 }
 0x222   : > { %668 = vst.msk [vmem:[%s208_s14] sm:$0xf] %vm667_vm0, %v666_v12 }
 0x223 PF: > { %s15_s15 = sadd.s32 1, %s839_s15  }
 0x224   : > { %p12_p4 = scmp.ge.s32.totalorder %s15_s15, 4  }
 0x226   :  { %14 = sbr.rel (!%p12_p4) target bundleno = 1 (0x1), region = 74 }

// kernel: triple_conv_up.10
= control target key start
LH: loop header
LB: loop body
LE: loop exit
PB: predicated region body
PF: predicated region fallthrough
CT: control target
= control target key end

     0   :  { %s870_s15 = smov 0   ;;  %s961_s0 = inlined_call_operand.vmem [shape: bf16[2,4,342], index: 0, kind: input, shape index: {}]   ;;  %s962_s1 = inlined_call_operand.vmem [shape: bf16[8,36], index: 1, kind: input, shape index: {}]   ;;  %s963_s2 = inlined_call_operand.vmem [shape: f32[1,288], index: 2, kind: input, shape index: {}]   ;;  %s964_s3 = inlined_call_operand.vmem [shape: f32[2,8,288], index: 3, kind: output, shape index: {0}]   ;;  %s965_s4 = inlined_call_operand.vmem [shape: f32[2,8,2], index: 4, kind: output, shape index: {1}]  }
   0x1 LB: > { %s747_s16 = sadd.s32 4294967295, %s831_s15   ;;  %p751_p0 = scmp.ge.s32.totalorder %s831_s15, 1  ;;  %s831_s15 = sphi %s870_s15, %s15_s15  }
   0x2   : > { %p165_p1 = scmp.lt.s32.totalorder %s831_s15, 3 }
   0x4   : > { %p166_p2 = pnand %p751_p0, %p165_p1 }
   0x5   : > { %p195_p3 = scmp.lt.s32.totalorder (!%p166_p2), %s747_s16, 1  ;;  %v223_v0 = vlaneseq (!%p166_p2)  ;;  %v833_v1 = vmov (!%p166_p2), 1983009808   ;;  %s834_s21 = smov (!%p166_p2), 126   ;;  %vm230_vm0 = vcmask (!%p166_p2), 254976   ;;  %v838_v24 = vmov (!%p166_p2), 0.0  }
   0x6   : > { %169 = sbr.rel (%p166_p2) target bundleno = 546 (0x222), region = 32  ;;  %v221_v2 = vunpack.c.l.s4 (!%p166_p2), %v833_v1  ;;  %s835_s22 = smov (!%p166_p2), 127   ;;  %774 = vmatprep.subr.bf16.mxu1 (!%p166_p2), %v838_v24  ;;  %vm843_vm1 = vmmov (!%p166_p2), 0   ;;  %v844_v42 = vmov (!%p166_p2), 0   ;;  %vm262_vm2 = vcmask (!%p166_p2), 257026  }
   0x7   : > { %v880_v3 = vshrl.u32 (!%p166_p2), %v223_v0, 7  ;;  %s836_s23 = smov (!%p166_p2), 110   ;;  %s837_s24 = smov (!%p166_p2), 109   ;;  %780 = vmatprep.mubr.msk.bf16.mxu1 (!%p166_p2), %vm843_vm1, %v838_v24  ;;  %571 = vmatprep.mubr.bf16.mxu0 (!%p166_p2), %v844_v42  ;;  %vm255_vm3 = vcmask (!%p166_p2), 1043456   ;;  %vm288_vm4 = vcmask (!%p166_p2), 1031168   ;;  %vm257_vm5 = vcmask (!%p166_p2), 1039360  }
   0x8   : > { %v222_v4 = vunpack.c.0.s8 (!%p166_p2), %v221_v2  ;;  %s839_s25 = smov (!%p166_p2), 108   ;;  %s840_s26 = smov (!%p166_p2), 92   ;;  %vm348_vm6 = vcmask (!%p166_p2), 891904   ;;  %vm318_vm7 = vcmask (!%p166_p2), 900096   ;;  %vm378_vm8 = vcmask (!%p166_p2), 883712  }
   0x9   : > { %s841_s27 = smov (!%p166_p2), 91   ;;  %s842_s28 = smov (!%p166_p2), 90   ;;  %vm408_vm9 = vcmask (!%p166_p2), 752640   ;;  %vm438_vm10 = vcmask (!%p166_p2), 744448   ;;  %vm468_vm11 = vcmask (!%p166_p2), 736256   ;;  %vm529_vm12 = vcmask (!%p166_p2), 1041408  }
   0xa   : > { %v884_v5 = vsub.s32 (!%p166_p2), %v222_v4, %v880_v3  ;;  %vm525_vm13 = vcmask (!%p166_p2), 293888   ;;  %vm622_vm14 = vcmask (!%p166_p2), 261120   ;;  %vm649_vm15 = vcmask (!%p166_p2), 7168  }
   0xd   : > { %s967_s16 = smov (!%p195_p3, %s747_s16), 1 }
   0xe   : > { %s784_s17 = smul.u32 6, %s967_s16  ;;  %s754_s11 = sshll.u32 %s967_s16, 3 }
   0xf   : > { %s785_s5 = smul.u32 24, %s967_s16  ;;  %s208_s14 = scalar_lea.vmem %s965_s4, %s754_s11 }
  0x10   : > { %s889_s20 = scalar_lea.vmem %s961_s0, %s784_s17 }
  0x11   : > { %v264_v6 = vld [vmem:[%s889_s20] sm:$0x3f]  ;;  %s204_s10 = scalar_lea.vmem %s964_s3, %s785_s5 }
  0x12   : > { %v232_v7 = vld [vmem:[%s889_s20] sm:$0x3f]  ;;  %v273_v9 = vrot.slane %v264_v6, %v884_v5  ;;  %v266_v12 = vcombine.high %v264_v6, %v264_v6 }
  0x13   : > { %v294_v8 = vld [vmem:[%s889_s20] sm:$0x3f]  ;;  %v248_v10 = vrot.slane %v232_v7, %v884_v5  ;;  %v234_v14 = vcombine.low %v232_v7, %v232_v7 }
  0x14   : > { %v324_v11 = vld [vmem:[%s889_s20] sm:$0x3f]  ;;  %281 = vrot.lane.b32.xlu1 %v273_v9, %s834_s21  ;;  %v310_v15 = vrot.slane %v294_v8, %v884_v5  ;;  %v280_v19 = vrot.slane %v266_v12, %v884_v5  ;;  %v296_v21 = vcombine.low %v294_v8, %v294_v8 }
  0x15   : > { %v210_v13 = vld [vmem:[%s889_s20] sm:$0x3f]  ;;  %251 = vrot.lane.b32.xlu0 %v248_v10, %s835_s22  ;;  %v333_v16 = vrot.slane %v324_v11, %v884_v5  ;;  %v326_v17 = vcombine.high %v324_v11, %v324_v11  ;;  %v241_v20 = vrot.slane %v234_v14, %v884_v5 }
  0x16   : > { %755 = vst.sshfl [vmem:[#allocation2] sm:$0xf pattern:$0x76325410] %v210_v13  ;;  %v212_v18 = vcombine.high %v210_v13, %v210_v13  ;;  %v354_v22 = vld [vmem:[%s889_s20] sm:$0x3f]  ;;  %v303_v26 = vrot.slane %v296_v21, %v884_v5 }
  0x17   : > { %v340_v25 = vrot.slane %v326_v17, %v884_v5  ;;  %v356_v27 = vcombine.low %v354_v22, %v354_v22  ;;  %v384_v28 = vld [vmem:[%s889_s20] sm:$0x3f]  ;;  %v370_v29 = vrot.slane %v354_v22, %v884_v5 }
  0x18   : > { %313 = vrot.lane.b32.xlu1 %v310_v15, %s836_s23  ;;  %v226_v23 = vrot.slane %v212_v18, %v884_v5  ;;  %v386_v31 = vcombine.high %v384_v28, %v384_v28  ;;  %v414_v32 = vld [vmem:[%s889_s20] sm:$0x3f]  ;;  %v393_v34 = vrot.slane %v384_v28, %v884_v5 }
  0x19   : > { %341 = vrot.lane.b32.xlu0 %v333_v16, %s837_s24  ;;  %v363_v30 = vrot.slane %v356_v27, %v884_v5  ;;  %v416_v35 = vcombine.low %v414_v32, %v414_v32  ;;  %v444_v36 = vld [vmem:[%s889_s20] sm:$0x3f]  ;;  %v430_v37 = vrot.slane %v414_v32, %v884_v5 }
  0x1a   : > { %231 = vst.msk [vmem:[#allocation2 + $0x8] sm:$0x3] %vm230_vm0, %v226_v23  ;;  %v400_v33 = vrot.slane %v386_v31, %v884_v5  ;;  %v446_v39 = vcombine.high %v444_v36, %v444_v36  ;;  %v453_v41 = vrot.slane %v444_v36, %v884_v5 }
  0x1b   : > { %v423_v38 = vrot.slane %v416_v35, %v884_v5 }
  0x1c   : > { %283 = vrot.lane.b32.xlu1 %v280_v19, %s834_s21  ;;  %v460_v40 = vrot.slane %v446_v39, %v884_v5 }
  0x1d   : > { %249 = vrot.lane.b32.xlu0 %v241_v20, %s835_s22 }
  0x20   : > { %343 = vrot.lane.b32.xlu1 %v340_v25, %s837_s24 }
  0x21   : > { %311 = vrot.lane.b32.xlu0 %v303_v26, %s836_s23 }
  0x24   : > { %373 = vrot.lane.b32.xlu1 %v370_v29, %s839_s25 }
  0x25   : > { %371 = vrot.lane.b32.xlu0 %v363_v30, %s839_s25 }
  0x28   : > { %403 = vrot.lane.b32.xlu1 %v400_v33, %s840_s26 }
  0x29   : > { %401 = vrot.lane.b32.xlu0 %v393_v34, %s840_s26 }
  0x2c   : > { %433 = vrot.lane.b32.xlu1 %v430_v37, %s841_s27 }
  0x2d   : > { %431 = vrot.lane.b32.xlu0 %v423_v38, %s841_s27 }
  0x30   : > { %463 = vrot.lane.b32.xlu1 %v460_v40, %s842_s28  ;;  %v474_v40 = vld [vmem:[%s962_s1] sm:$0xf] }
  0x31   : > { %461 = vrot.lane.b32.xlu0 %v453_v41, %s842_s28 }
  0x86   : > { %v282_v43 = vpop.permute.xlu1 %281 }
  0x87   : > { %v252_v44 = vpop.permute.xlu0 %251  ;;  %v285_v49 = vrot.slane %v282_v43, 4 }
  0x88   : > { %263 = vst.msk [vmem:[#allocation2 + $0x8] sm:$0xc] %vm262_vm2, %v252_v44  ;;  %v254_v50 = vrot.slane %v252_v44, 4  ;;  %v624_v44 = vld [vmem:[%s963_s2] sm:$0x7] }
  0x8a   : > { %v314_v45 = vpop.permute.xlu1 %313 }
  0x8b   : > { %v342_v46 = vpop.permute.xlu0 %341  ;;  %323 = vst.msk [vmem:[#allocation2 + $0x14] sm:$0xc] %vm262_vm2, %v314_v45  ;;  %v316_v59 = vrot.slane %v314_v45, 4 }
  0x8c   : > { %v345_v60 = vrot.slane %v342_v46, 4 }
  0x8e   : > { %v284_v47 = vpop.permute.xlu1 %283 }
  0x8f   : > { %v250_v48 = vpop.permute.xlu0 %249  ;;  %v286_v51 = vrot.slane %v284_v47, 4  ;;  %293 = vst.msk [vmem:[#allocation2 + $0x14] sm:$0x3] %vm230_vm0, %v284_v47  ;;  %v632_v47 = vsub.s32 1, %v880_v3 }
  0x90   : > { %v253_v52 = vrot.slane %v250_v48, 4 }
  0x91   : > { %v287_v53 = vsel %vm255_vm3, %v285_v49, %v286_v51 }
  0x92   : > { %v256_v54 = vsel %vm255_vm3, %v253_v52, %v254_v50  ;;  %v289_v55 = vsel %vm288_vm4, %v282_v43, %v287_v53  ;;  %v344_v57 = vpop.permute.xlu1 %343  ;;  %v633_v52 = vrot.slane %v624_v44, %v632_v47 }
  0x93   : > { %v258_v56 = vsel %vm257_vm5, %v250_v48, %v256_v54  ;;  %v312_v58 = vpop.permute.xlu0 %311  ;;  %292 = vst [vmem:[#allocation2 + $0xc] sm:$0x33] %v289_v55  ;;  %v346_v61 = vrot.slane %v344_v57, 4  ;;  %353 = vst.msk [vmem:[#allocation2 + $0x20] sm:$0x3] %vm230_vm0, %v344_v57 }
  0x94   : > { %261 = vst [vmem:[#allocation2] sm:$0xcc] %v258_v56  ;;  %v315_v62 = vrot.slane %v312_v58, 4 }
  0x95   : > { %v347_v63 = vsel %vm255_vm3, %v345_v60, %v346_v61 }
  0x96   : > { %v317_v0 = vsel %vm255_vm3, %v315_v62, %v316_v59  ;;  %v349_v1 = vsel %vm348_vm6, %v342_v46, %v347_v63  ;;  %v374_v4 = vpop.permute.xlu1 %373  ;;  %v815_v6 = vld [vmem:[#allocation2 + $0x8] ss:$12 sps:$4 sm:$0xff]   ;;  %v628_v46 = vsub.s32 0, %v880_v3 }
  0x97   : > { %v319_v2 = vsel %vm318_vm7, %v312_v58, %v317_v0  ;;  %v372_v5 = vpop.permute.xlu0 %371  ;;  %352 = vst [vmem:[#allocation2 + $0x18] sm:$0x33] %v349_v1  ;;  %v376_v7 = vrot.slane %v374_v4, 4  ;;  %383 = vst.msk [vmem:[#allocation2 + $0x20] sm:$0xc] %vm262_vm2, %v374_v4  ;;  %775 = vmatpush3.bf16.msra.mxu1 %v815_v6 }
  0x98   : > { %322 = vst [vmem:[#allocation2 + $0xc] sm:$0xcc] %v319_v2  ;;  %v375_v8 = vrot.slane %v372_v5, 4  ;;  %776 = vmatprep.subr.bf16.mxu1 %v838_v24  ;;  %v629_v50 = vrot.slane %v624_v44, %v628_v46 }
  0x9a   : > { %v377_v9 = vsel %vm255_vm3, %v375_v8, %v376_v7  ;;  %v404_v11 = vpop.permute.xlu1 %403 }
  0x9b   : > { %v379_v10 = vsel %vm378_vm8, %v372_v5, %v377_v9  ;;  %v402_v12 = vpop.permute.xlu0 %401  ;;  %v406_v13 = vrot.slane %v404_v11, 4  ;;  %413 = vst.msk [vmem:[#allocation2 + $0x2c] sm:$0x3] %vm230_vm0, %v404_v11  ;;  %v475_v16 = vld [vmem:[#allocation2] sm:$0xff] }
  0x9c   : > { %382 = vst [vmem:[#allocation2 + $0x18] sm:$0xcc] %v379_v10  ;;  %v405_v14 = vrot.slane %v402_v12, 4 }
  0x9e   : > { %v407_v15 = vsel %vm255_vm3, %v405_v14, %v406_v13  ;;  %v434_v18 = vpop.permute.xlu1 %433 }
  0x9f   : > { %v409_v17 = vsel %vm408_vm9, %v402_v12, %v407_v15  ;;  %v432_v19 = vpop.permute.xlu0 %431  ;;  %v477_v20 = vld [vmem:[#allocation2 + $0xc] sm:$0xff]  ;;  %v436_v22 = vrot.slane %v434_v18, 4  ;;  %443 = vst.msk [vmem:[#allocation2 + $0x2c] sm:$0xc] %vm262_vm2, %v434_v18 }
  0xa0   : > { %v816_v21 = vld [vmem:[#allocation2 + $0x4] ss:$12 sps:$4 sm:$0xff]   ;;  %412 = vst [vmem:[#allocation2 + $0x24] sm:$0x33] %v409_v17  ;;  %v435_v23 = vrot.slane %v432_v19, 4  ;;  %v756_v25 = vcombine.low %v475_v16, %v477_v20 }
  0xa1   : > { %539 = vmatprep.subr.bf16.mxu0 %v816_v21 }
  0xa2   : > { %v437_v26 = vsel %vm255_vm3, %v435_v23, %v436_v22  ;;  %540 = vmatpush1.bf16.msra.mxu0 %v756_v25  ;;  %v464_v28 = vpop.permute.xlu1 %463 }
  0xa3   : > { %v439_v27 = vsel %vm438_vm10, %v432_v19, %v437_v26  ;;  %v462_v29 = vpop.permute.xlu0 %461  ;;  %v466_v30 = vrot.slane %v464_v28, 4  ;;  %473 = vst.msk [vmem:[#allocation2 + $0x38] sm:$0x3] %vm230_vm0, %v464_v28  ;;  %vm659_vm0 = vcmask 15368  }
  0xa4   : > { %442 = vst [vmem:[#allocation2 + $0x24] sm:$0xcc] %v439_v27  ;;  %v465_v31 = vrot.slane %v462_v29, 4 }
  0xa6   : > { %v467_v32 = vsel %vm255_vm3, %v465_v31, %v466_v30  ;;  %v818_v34 = vld [vmem:[#allocation2 + $0x20] ss:$12 sps:$4 sm:$0xff]  }
  0xa7   : > { %v469_v33 = vsel %vm468_vm11, %v462_v29, %v467_v32  ;;  %777 = vmatpush3.bf16.msra.mxu1 %v818_v34 }
  0xa8   : > { %472 = vst [vmem:[#allocation2 + $0x30] sm:$0x33] %v469_v33  ;;  %778 = vmatprep.subr.bf16.mxu1 %v838_v24  ;;  %v636_v24 = vsub.s32 2, %v880_v3 }
  0xaa   : > { %v822_v37 = vld [vmem:[#allocation2 + $0x38] ss:$0 sps:$4 sm:$0x33]   ;;  %v637_v45 = vrot.slane %v624_v44, %v636_v24 }
  0xab   : > { %v819_v35 = vld [vmem:[#allocation2 + $0x1c] ss:$12 sps:$4 sm:$0xff]   ;;  %v821_v36 = vld [vmem:[#allocation2 + $0x18] ss:$12 sps:$4 sm:$0xff]   ;;  %v537_v38 = vsel %vm529_vm12, %v822_v37, 0 }
  0xac   : > { %541 = vmatprep.subr.bf16.mxu0 %v819_v35  ;;  %779 = vmatpush3.bf16.msra.mxu1 %v537_v38 }
  0xad   : > { %542 = vmatpush1.bf16.msra.mxu0 %v821_v36 }
  0xaf   : > { %v483_v39 = vld [vmem:[#allocation2 + $0x30] sm:$0x33]  ;;  %781 = vmatmul.mubr.msk.bf16.vlgmr.msra.gmra.mrb[0].mxu1 %vm525_vm13, %v474_v40 }
  0xb0   : > { %v763_v41 = vcombine.high %v483_v39, %v483_v39  ;;  %v762_v42 = vcombine.low %v483_v39, %v483_v39 }
  0xb2   : > { %765 = vmatprep.subr.msk.bf16.mxu0 %vm529_vm12, %v763_v41  ;;  %v531_v43 = vsel %vm529_vm12, %v762_v42, 0 }
  0xb3   : > { %544 = vmatpush1.bf16.msra.mxu0 %v531_v43 }
  0xb6   : > { %766 = vmatmul.mubr.msk.bf16.vlgmr.msra.gmra.mrb[0].mxu0 %vm525_vm13, %v474_v40 }
 0x182   : > { %v614_v48 = vpop.f32.mrb[0].mxu1 }
 0x183   : > { %623 = vst.msk [vmem:[%s204_s10 + $0x10] sm:$0xff] %vm622_vm14, %v614_v48  ;;  %v643_v49 = vmul.f32 %v637_v45, %v614_v48  ;;  %v782_v51 = vpop.f32.mrb[1].mxu1 }
 0x184   : > { %v617_v53 = vpop.f32.mrb[2].mxu1 }
 0x185   : > { %v783_v54 = vpop.f32.mrb[3].mxu1  ;;  %v653_v56 = vmul.f32 %v643_v49, %v643_v49  ;;  %v645_v62 = vsel %vm622_vm14, %v643_v49, 0.0 }
 0x187   : > { %v655_v1 = vsel %vm622_vm14, %v653_v56, 0.0 }
 0x189   : > { %v573_v55 = vpop.f32.mrb[0].mxu0 }
 0x18a   : > { %620 = vst [vmem:[%s204_s10] sm:$0xff] %v573_v55  ;;  %v641_v57 = vmul.f32 %v629_v50, %v573_v55  ;;  %v575_v58 = vpop.f32.mrb[1].mxu0 }
 0x18b   : > { %621 = vst [vmem:[%s204_s10 + $0x8] sm:$0xff] %v575_v58  ;;  %v642_v3 = vmul.f32 %v633_v52, %v575_v58  ;;  %v577_v59 = vpop.f32.mrb[2].mxu0 }
 0x18c   : > { %v651_v60 = vmul.f32 %v641_v57, %v641_v57  ;;  %v578_v61 = vpop.f32.mrb[3].mxu0 }
 0x18d   : > { %v652_v63 = vmul.f32 %v642_v3, %v642_v3  ;;  %v644_v0 = vadd.f32 %v642_v3, %v641_v57 }
 0x18f   : > { %v646_v2 = vadd.f32 %v645_v62, %v644_v0  ;;  %v654_v4 = vadd.f32 %v652_v63, %v651_v60 }
 0x191   : > { %647 = vadd.xlane.f32.xlu0 %v646_v2  ;;  %v656_v5 = vadd.f32 %v655_v1, %v654_v4 }
 0x193   : > { %657 = vadd.xlane.f32.xlu1 %v656_v5 }
 0x21e   : > { %v648_v6 = vpop.xlane.xlu0 %647 }
 0x21f   : > { %650 = vst.msk [vmem:[%s208_s14] sm:$0xff] %vm649_vm15, %v648_v6 }
 0x220   : > { %v658_v7 = vpop.xlane.xlu1 %657 }
 0x221   : > { %660 = vst.msk [vmem:[%s208_s14] sm:$0xff] %vm659_vm0, %v658_v7 }
 0x222 PF: > { %s15_s15 = sadd.s32 1, %s831_s15  }
 0x223   : > { %p12_p4 = scmp.ge.s32.totalorder %s15_s15, 4  }
 0x225   :  { %14 = sbr.rel (!%p12_p4) target bundleno = 1 (0x1), region = 74 }

// kernel: triple_conv_up.11
= control target key start
LH: loop header
LB: loop body
LE: loop exit
PB: predicated region body
PF: predicated region fallthrough
CT: control target
= control target key end

     0   :  { %s303_s12 = smov 0   ;;  %s326_s0 = inlined_call_operand.vmem [shape: f32[2,8,288], index: 0, kind: input, shape index: {}]   ;;  %s327_s1 = inlined_call_operand.vmem [shape: f32[8,1], index: 1, kind: input, shape index: {}]   ;;  %s328_s2 = inlined_call_operand.vmem [shape: f32[8,1], index: 2, kind: input, shape index: {}]   ;;  %s329_s3 = inlined_call_operand.vmem [shape: f32[2,8,288], index: 3, kind: output, shape index: {}]  }
   0x1 LB: > { %s254_s13 = sadd.s32 4294967295, %s280_s12   ;;  %p258_p0 = scmp.ge.s32.totalorder %s280_s12, 1  ;;  %s280_s12 = sphi %s303_s12, %s13_s12  }
   0x2   : > { %p137_p1 = scmp.lt.s32.totalorder %s280_s12, 3 }
   0x4   : > { %p138_p2 = pnand %p258_p0, %p137_p1 }
   0x5   : > { %v174_v0 = vld [vmem:[%s327_s1] sm:$0xff] (!%p138_p2)  ;;  %v282_v1 = vmov (!%p138_p2), 0   ;;  %p161_p3 = scmp.lt.s32.totalorder (!%p138_p2), %s254_s13, 1  ;;  %vm197_vm0 = vcmask (!%p138_p2), 261120  }
   0x6   : > { %141 = sbr.rel (%p138_p2) target bundleno = 145 (0x91), region = 32  ;;  %273 = vset.pattern.permute.xlu0 (!%p138_p2), %v282_v1  ;;  %v183_v2 = vld [vmem:[%s328_s2] sm:$0xff] (!%p138_p2) }
   0x7   : > { %177 = vperm.xlu0 (!%p138_p2), %273, %v174_v0  }
   0xb   : > { %186 = vperm.xlu0 (!%p138_p2), %273, %v183_v2  }
   0xd   : > { %s331_s13 = smov (!%p161_p3, %s254_s13), 1 }
   0xe   : > { %s263_s18 = smul.u32 24, %s331_s13 }
  0x10   : > { %s165_s21 = scalar_lea.vmem %s326_s0, %s263_s18  ;;  %s170_s24 = scalar_lea.vmem %s329_s3, %s263_s18 }
  0x11   : > { %v171_v4 = vld [vmem:[%s165_s21] sm:$0xff]  ;;  %v172_v5 = vld [vmem:[%s165_s21 + $0x8] sm:$0xff]  ;;  %v173_v6 = vld [vmem:[%s165_s21 + $0x10] sm:$0xff] }
  0x86   : > { %v178_v3 = vpop.permute.xlu0 %177 }
  0x87   : > { %v180_v7 = vmul.f32 %v178_v3, %v171_v4  ;;  %v181_v8 = vmul.f32 %v178_v3, %v172_v5  ;;  %v182_v9 = vmul.f32 %v178_v3, %v173_v6 }
  0x8a   : > { %v187_v10 = vpop.permute.xlu0 %186 }
  0x8b   : > { %v189_v11 = vadd.f32 %v187_v10, %v180_v7  ;;  %v190_v12 = vadd.f32 %v187_v10, %v181_v8  ;;  %v191_v13 = vadd.f32 %v187_v10, %v182_v9 }
  0x8d   : > { %v192_v14 = vmax.f32 %v189_v11, 0.0  ;;  %v193_v15 = vmax.f32 %v190_v12, 0.0  ;;  %v194_v16 = vmax.f32 %v191_v13, 0.0 }
  0x8f   : > { %195 = vst [vmem:[%s170_s24] sm:$0xff] %v192_v14  ;;  %196 = vst [vmem:[%s170_s24 + $0x8] sm:$0xff] %v193_v15 }
  0x90   : > { %198 = vst.msk [vmem:[%s170_s24 + $0x10] sm:$0xff] %vm197_vm0, %v194_v16 }
  0x91 PF: > { %s13_s12 = sadd.s32 1, %s280_s12  }
  0x92   : > { %p10_p4 = scmp.ge.s32.totalorder %s13_s12, 4  }
  0x94   :  { %12 = sbr.rel (!%p10_p4) target bundleno = 1 (0x1), region = 62 }

</bundles_post_ra>
